<compile_context>
chip_gen: v6e
topology: v6e:2x2x1
jax: 0.10.0
libtpu: 0.0.40
codegen_flags: <defaults>
</compile_context>

<pallas_src>
import jax
import jax.numpy as jnp
from jax import lax
from jax.experimental import pallas as pl
from jax.experimental.pallas import tpu as pltpu

# ---- static problem sizes (Linear(64*16, 64) forces the 2nd pooled length to be 16 -> L_IN = 70) ----
B = 2              # batch
L_IN = 70          # input length: conv1 -> 69, pool1 -> 34, conv2 -> 33, pool2 -> 16
C = 64             # channels
K = 6              # conv kernel size
PAD = 2
L1 = L_IN + 2 * PAD - K + 1          # 69   conv1 output length
LP1 = (L1 - 3) // 2 + 1              # 34   pool1 output length
L2 = LP1 + 2 * PAD - K + 1           # 33   conv2 output length
LP2 = (L2 - 3) // 2 + 1              # 16   pool2 output length
L1R = 144                            # conv1 rows (B*L1 = 138) padded up to a multiple of 8
BLK1 = 40                            # per-batch row block in the conv2 stage (2 + 34 + 2 -> 40)
EPS = 1e-5


def discriminator_kernel(x1, w1, b1, g1, be1, rm1,
                         dsel, w2, b2, g2, be2, rm2,
                         esel, wc1, dmask, bsum, rfold, fb1,
                         wf2, fb2, wf3, fb3,
                         out, z2):
    f32, bf16 = jnp.float32, jnp.bfloat16

    # ---- Conv1d(1, 64, k=6, pad=2): one im2col matmul, then ReLU + BatchNorm (masked batch stats) ----
    a1 = jnp.dot(x1[...], w1[...], preferred_element_type=f32) + b1[...]        # (144, 64)
    a1 = jnp.maximum(a1, 0.0)
    m1 = rm1[...]                                                               # (144, 1): 1.0 on the 138 real rows
    mu1 = jnp.sum(a1 * m1, axis=0, keepdims=True) * (1.0 / (B * L1))
    c1 = a1 - mu1
    var1 = jnp.sum(c1 * c1 * m1, axis=0, keepdims=True) * (1.0 / (B * L1))
    a1n = (c1 * lax.rsqrt(var1 + EPS) * g1[...] + be1[...]).astype(bf16)

    # ---- MaxPool1d(3, 2): three one-hot matmuls fusing window offset + stride-2 + conv2 zero padding.
    #      Output row 40*b + 2 + j <- conv1 row 69*b + 2*j + w; every other row is an exact zero. ----
    p1pad = jnp.maximum(
        jnp.maximum(jnp.dot(dsel[0], a1n, preferred_element_type=f32),
                    jnp.dot(dsel[1], a1n, preferred_element_type=f32)),
        jnp.dot(dsel[2], a1n, preferred_element_type=f32))                      # (80, 64)

    # Stash the padded pooled activations; rows 80..87 stay zero so the k-shifted reads are in-bounds.
    z2[0:2 * BLK1, :] = p1pad
    z2[2 * BLK1:, :] = jnp.zeros((8, C), f32)

    # ---- Conv1d(64, 64, k=6, pad=2): ONE fused K=384 im2col matmul covering both batch elements.
    #      x2[t, 64*k + cin] = z2[t + k, cin]; rows with (t mod 40) >= 33 are junk and masked below. ----
    x2 = jnp.concatenate([z2[k:k + 2 * BLK1, :] for k in range(K)], axis=1).astype(bf16)   # (80, 384)
    a2 = jnp.dot(x2, w2[...], preferred_element_type=f32) + b2[...]             # (80, 64)
    a2 = jnp.maximum(a2, 0.0)
    m2 = rm2[...]                                                               # (80, 1): 1.0 on the 66 real rows
    mu2 = jnp.sum(a2 * m2, axis=0, keepdims=True) * (1.0 / (B * L2))
    c2 = a2 - mu2
    var2 = jnp.sum(c2 * c2 * m2, axis=0, keepdims=True) * (1.0 / (B * L2))
    a2n = (c2 * lax.rsqrt(var2 + EPS) * g2[...] + be2[...]).astype(bf16)

    # ---- MaxPool1d(3, 2): output row 16*b + j <- conv2 row 40*b + 2*j + w (junk rows never selected) ----
    p2 = jnp.maximum(
        jnp.maximum(jnp.dot(esel[0], a2n, preferred_element_type=f32),
                    jnp.dot(esel[1], a2n, preferred_element_type=f32)),
        jnp.dot(esel[2], a2n, preferred_element_type=f32)).astype(bf16)         # (32, 64)

    # ---- Flatten + Linear(64*16, 64) with no (t, c) reshape and no per-t loop:
    #        Y[r, 64*t + o] = sum_c p2[r, c] * Wf1[t, c, o]
    #      keep only the t == (r mod 16) blocks, sum the rows of each batch, fold the 64-strided lanes. ----
    y = jnp.dot(p2, wc1[...], preferred_element_type=f32)                       # (32, 1024)
    yd = (y * dmask[...]).astype(bf16)
    s = jnp.dot(bsum[...], yd, preferred_element_type=f32).astype(bf16)         # (2, 1024)
    h = jnp.dot(s, rfold[...], preferred_element_type=f32) + fb1[...]           # (2, 64)
    h = jnp.maximum(h, 0.0).astype(bf16)

    # ---- Linear(64, 32) + ReLU, Linear(32, 1) ----
    h2 = jnp.maximum(jnp.dot(h, wf2[...], preferred_element_type=f32) + fb2[...], 0.0).astype(bf16)
    out[...] = jnp.dot(h2, wf3[...], preferred_element_type=f32) + fb3[...]


def prepare_params(params):
    """One-time re-layout of the PyTorch-shaped parameters into kernel operands (hoisted out of the
    per-call forward).  Matmul operands are bf16; bias / BatchNorm terms stay f32."""
    (cw1, cb1, g1, be1, cw2, cb2, g2, be2, fw1, fb1, fw2, fb2, fw3, fb3) = params
    f32, bf16 = jnp.float32, jnp.bfloat16

    # conv1 im2col weight: w1p[k, c] = cw1[c, 0, k], padded to 8 taps.
    w1p = jnp.zeros((8, C), f32).at[:K, :].set(cw1[:, 0, :].T).astype(bf16)
    # conv2 fused im2col weight: w2s[64*k + cin, cout] = cw2[cout, cin, k].
    w2s = jnp.transpose(cw2, (2, 1, 0)).reshape(K * C, C).astype(bf16)
    # fc1 weight: Wcat[c, 64*t + o] = fw1[o, c*16 + t]   (PyTorch flatten of (B, C, 16) is c-major).
    wcat = jnp.transpose(fw1.reshape(C, C, LP2), (1, 2, 0)).reshape(C, LP2 * C).astype(bf16)
    # Rfold folds the 64-strided lane groups of the masked fc1 product back onto the 64 outputs.
    rfold = ((jnp.arange(LP2 * C)[:, None] % C) == jnp.arange(C)[None, :]).astype(bf16)

    # pool1 one-hot selectors (3 window offsets): output row 40*b + 2 + j <- conv1 row 69*b + 2*j + w.
    r1 = jnp.arange(2 * BLK1)
    j1 = (r1 % BLK1) - 2
    valid1 = (j1 >= 0) & (j1 < LP1)
    src1 = L1 * (r1 // BLK1) + 2 * jnp.where(valid1, j1, 0)
    cols1 = jnp.arange(L1R)
    dw1 = jnp.stack(
        [valid1[:, None] & (cols1[None, :] == (src1 + w)[:, None]) for w in range(3)]
    ).astype(bf16)                                                              # (3, 80, 144)

    # pool2 one-hot selectors: output row 16*b + j <- conv2 row 40*b + 2*j + w.
    r2 = jnp.arange(B * LP2)
    src2 = BLK1 * (r2 // LP2) + 2 * (r2 % LP2)
    cols2 = jnp.arange(2 * BLK1)
    ew2 = jnp.stack(
        [(cols2[None, :] == (src2 + w)[:, None]) for w in range(3)]
    ).astype(bf16)                                                              # (3, 32, 80)

    # fc1 block-diagonal mask, per-batch row-sum selector, valid-row masks for the BN statistics.
    dmask = ((jnp.arange(LP2 * C)[None, :] // C) == (r2 % LP2)[:, None]).astype(f32)   # (32, 1024)
    bsum = ((r2[None, :] // LP2) == jnp.arange(B)[:, None]).astype(bf16)               # (2, 32)
    rm1 = (jnp.arange(L1R) < B * L1).astype(f32)[:, None]                              # (144, 1)
    rm2 = ((jnp.arange(2 * BLK1) % BLK1) < L2).astype(f32)[:, None]                    # (80, 1)

    return (w1p, cb1[None, :].astype(f32), g1[None, :].astype(f32), be1[None, :].astype(f32), rm1, dw1,
            w2s, cb2[None, :].astype(f32), g2[None, :].astype(f32), be2[None, :].astype(f32), rm2, ew2,
            wcat, dmask, bsum, rfold, fb1[None, :].astype(f32),
            fw2.T.astype(jnp.bfloat16), fb2[None, :].astype(f32),
            fw3.T.astype(jnp.bfloat16), fb3[None, :].astype(f32))


def discriminator_forward(x, prep):
    """Per-call wrapper: only the input-dependent conv1 im2col is built here."""
    f32, bf16 = jnp.float32, jnp.bfloat16
    xs = x[:, 0, :].astype(f32)                                  # (B, L_IN)
    xp = jnp.pad(xs, ((0, 0), (PAD, PAD)))                       # (B, L_IN + 4)
    x1 = jnp.stack([xp[:, k:k + L1] for k in range(K)], axis=-1).reshape(B * L1, K)
    x1 = jnp.pad(x1, ((0, L1R - B * L1), (0, 8 - K))).astype(bf16)   # (144, 8), zero pad rows / taps

    vmem = pl.BlockSpec(memory_space=pltpu.MemorySpace.VMEM)
    args = (x1,) + tuple(prep)
    return pl.pallas_call(
        discriminator_kernel,
        out_shape=jax.ShapeDtypeStruct((B, 1), f32),
        in_specs=[vmem] * len(args),
        out_specs=vmem,
        scratch_shapes=[pltpu.VMEM((2 * BLK1 + 8, C), jnp.float32)],
    )(*args)


def reference_forward(x, params):
    """Pure-JAX (non-Pallas) replica of the PyTorch forward, for a correctness check."""
    (cw1, cb1, g1, be1, cw2, cb2, g2, be2, fw1, fb1, fw2, fb2, fw3, fb3) = params
    dn = ('NCH', 'OIH', 'NCH')

    def bn(y, g, b):
        mu = jnp.mean(y, axis=(0, 2), keepdims=True)
        var = jnp.mean((y - mu) ** 2, axis=(0, 2), keepdims=True)
        return (y - mu) / jnp.sqrt(var + EPS) * g[None, :, None] + b[None, :, None]

    def mp(y):
        return lax.reduce_window(y, -jnp.inf, lax.max, (1, 1, 3), (1, 1, 2), 'VALID')

    y = lax.conv_general_dilated(x, cw1, (1,), [(PAD, PAD)], dimension_numbers=dn)
    y = jnp.maximum(y + cb1[None, :, None], 0.0)
    y = mp(bn(y, g1, be1))
    y = lax.conv_general_dilated(y, cw2, (1,), [(PAD, PAD)], dimension_numbers=dn)
    y = jnp.maximum(y + cb2[None, :, None], 0.0)
    y = mp(bn(y, g2, be2))
    y = y.reshape(y.shape[0], -1)                    # (B, 64*16), flat index = c*16 + t (PyTorch order)
    y = jnp.maximum(y @ fw1.T + fb1, 0.0)
    y = jnp.maximum(y @ fw2.T + fb2, 0.0)
    return y @ fw3.T + fb3


if __name__ == "__main__":
    f32 = jnp.float32
    keys = jax.random.split(jax.random.PRNGKey(0), 16)
    # Deterministic synthetic parameters (PyTorch-shaped), small scales.
    cw1 = 0.30 * jax.random.normal(keys[0], (C, 1, K), f32)
    cb1 = 0.10 * jax.random.normal(keys[1], (C,), f32)
    g1 = 1.0 + 0.10 * jax.random.normal(keys[2], (C,), f32)
    be1 = 0.10 * jax.random.normal(keys[3], (C,), f32)
    cw2 = 0.08 * jax.random.normal(keys[4], (C, C, K), f32)
    cb2 = 0.10 * jax.random.normal(keys[5], (C,), f32)
    g2 = 1.0 + 0.10 * jax.random.normal(keys[6], (C,), f32)
    be2 = 0.10 * jax.random.normal(keys[7], (C,), f32)
    fw1 = 0.03 * jax.random.normal(keys[8], (C, C * LP2), f32)
    fb1 = 0.10 * jax.random.normal(keys[9], (C,), f32)
    fw2 = 0.10 * jax.random.normal(keys[10], (32, C), f32)
    fb2 = 0.10 * jax.random.normal(keys[11], (32,), f32)
    fw3 = 0.20 * jax.random.normal(keys[12], (1, 32), f32)
    fb3 = 0.10 * jax.random.normal(keys[13], (1,), f32)
    params = (cw1, cb1, g1, be1, cw2, cb2, g2, be2, fw1, fb1, fw2, fb2, fw3, fb3)

    x = jax.random.normal(keys[14], (B, 1, L_IN), f32)           # PyTorch NCL input

    prep = prepare_params(params)                                # parameter re-layout done ONCE
    out = jax.block_until_ready(jax.jit(discriminator_forward)(x, prep))
    ref = jax.block_until_ready(reference_forward(x, params))
    assert out.shape == (B, 1), out.shape
    # bf16 MXU operands (vs the all-f32 reference) leave ~1e-2-level differences; 1e-1 still catches bugs.
    max_diff = float(jnp.max(jnp.abs(out - ref)))
    assert max_diff < 1e-1, f"kernel mismatch vs reference, max abs diff = {max_diff}"
    print("KERNEL_OK")
</pallas_src>

<mosaic_0001>
module attributes {stable_mosaic.version = 11 : i64} {
  func.func @discriminator_kernel(%arg0: memref<144x8xbf16, #tpu.memory_space<vmem>>, %arg1: memref<8x64xbf16, #tpu.memory_space<vmem>>, %arg2: memref<1x64xf32, #tpu.memory_space<vmem>>, %arg3: memref<1x64xf32, #tpu.memory_space<vmem>>, %arg4: memref<1x64xf32, #tpu.memory_space<vmem>>, %arg5: memref<144x1xf32, #tpu.memory_space<vmem>>, %arg6: memref<3x80x144xbf16, #tpu.memory_space<vmem>>, %arg7: memref<384x64xbf16, #tpu.memory_space<vmem>>, %arg8: memref<1x64xf32, #tpu.memory_space<vmem>>, %arg9: memref<1x64xf32, #tpu.memory_space<vmem>>, %arg10: memref<1x64xf32, #tpu.memory_space<vmem>>, %arg11: memref<80x1xf32, #tpu.memory_space<vmem>>, %arg12: memref<3x32x80xbf16, #tpu.memory_space<vmem>>, %arg13: memref<64x1024xbf16, #tpu.memory_space<vmem>>, %arg14: memref<32x1024xf32, #tpu.memory_space<vmem>>, %arg15: memref<2x32xbf16, #tpu.memory_space<vmem>>, %arg16: memref<1024x64xbf16, #tpu.memory_space<vmem>>, %arg17: memref<1x64xf32, #tpu.memory_space<vmem>>, %arg18: memref<64x32xbf16, #tpu.memory_space<vmem>>, %arg19: memref<1x32xf32, #tpu.memory_space<vmem>>, %arg20: memref<32x1xbf16, #tpu.memory_space<vmem>>, %arg21: memref<1x1xf32, #tpu.memory_space<vmem>>, %arg22: memref<2x1xf32, #tpu.memory_space<vmem>>, %arg23: memref<88x64xf32, #tpu.memory_space<vmem>>) attributes {dimension_semantics = [], scalar_prefetch = 0 : i64, scratch_operands = 1 : i64, tpu.core_type = #tpu.core_type<tc>} {
    %c0 = arith.constant 0 : index
    %c0_0 = arith.constant 0 : index
    %0 = vector.load %arg0[%c0, %c0_0] : memref<144x8xbf16, #tpu.memory_space<vmem>>, vector<144x8xbf16>
    %c0_1 = arith.constant 0 : index
    %c0_2 = arith.constant 0 : index
    %1 = vector.load %arg1[%c0_1, %c0_2] : memref<8x64xbf16, #tpu.memory_space<vmem>>, vector<8x64xbf16>
    %cst = arith.constant dense<0.000000e+00> : vector<144x64xf32>
    %2 = tpu.matmul %0, %1, %cst {dimension_numbers = #tpu.dot_dimension_numbers<[1], [0], [0], [1], [0, 0, 1, 1], [], []>} : vector<144x8xbf16>, vector<8x64xbf16>, vector<144x64xf32> -> vector<144x64xf32>
    %c0_3 = arith.constant 0 : index
    %c0_4 = arith.constant 0 : index
    %3 = vector.load %arg2[%c0_3, %c0_4] : memref<1x64xf32, #tpu.memory_space<vmem>>, vector<1x64xf32>
    %4 = vector.broadcast %3 : vector<1x64xf32> to vector<144x64xf32>
    %5 = arith.addf %2, %4 : vector<144x64xf32>
    %cst_5 = arith.constant 0.000000e+00 : f32
    %6 = vector.broadcast %cst_5 : f32 to vector<144x64xf32>
    %7 = arith.maximumf %5, %6 : vector<144x64xf32>
    %c0_6 = arith.constant 0 : index
    %c0_7 = arith.constant 0 : index
    %8 = vector.load %arg5[%c0_6, %c0_7] : memref<144x1xf32, #tpu.memory_space<vmem>>, vector<144x1xf32>
    %9 = vector.broadcast %8 : vector<144x1xf32> to vector<144x64xf32>
    %10 = arith.mulf %7, %9 : vector<144x64xf32>
    %cst_8 = arith.constant dense<0.000000e+00> : vector<64xf32>
    %11 = vector.multi_reduction <add>, %10, %cst_8 [0] : vector<144x64xf32> to vector<64xf32>
    %12 = vector.shape_cast %11 : vector<64xf32> to vector<1x64xf32>
    %cst_9 = arith.constant 0.00724637694 : f32
    %13 = vector.broadcast %cst_9 : f32 to vector<1x64xf32>
    %14 = arith.mulf %12, %13 : vector<1x64xf32>
    %15 = vector.broadcast %14 : vector<1x64xf32> to vector<144x64xf32>
    %16 = arith.subf %7, %15 : vector<144x64xf32>
    %17 = arith.mulf %16, %16 : vector<144x64xf32>
    %18 = vector.broadcast %8 : vector<144x1xf32> to vector<144x64xf32>
    %19 = arith.mulf %17, %18 : vector<144x64xf32>
    %cst_10 = arith.constant dense<0.000000e+00> : vector<64xf32>
    %20 = vector.multi_reduction <add>, %19, %cst_10 [0] : vector<144x64xf32> to vector<64xf32>
    %21 = vector.shape_cast %20 : vector<64xf32> to vector<1x64xf32>
    %cst_11 = arith.constant 0.00724637694 : f32
    %22 = vector.broadcast %cst_11 : f32 to vector<1x64xf32>
    %23 = arith.mulf %21, %22 : vector<1x64xf32>
    %cst_12 = arith.constant 9.99999974E-6 : f32
    %24 = vector.broadcast %cst_12 : f32 to vector<1x64xf32>
    %25 = arith.addf %23, %24 : vector<1x64xf32>
    %26 = math.rsqrt %25 : vector<1x64xf32>
    %27 = vector.broadcast %26 : vector<1x64xf32> to vector<144x64xf32>
    %28 = arith.mulf %16, %27 : vector<144x64xf32>
    %c0_13 = arith.constant 0 : index
    %c0_14 = arith.constant 0 : index
    %29 = vector.load %arg3[%c0_13, %c0_14] : memref<1x64xf32, #tpu.memory_space<vmem>>, vector<1x64xf32>
    %30 = vector.broadcast %29 : vector<1x64xf32> to vector<144x64xf32>
    %31 = arith.mulf %28, %30 : vector<144x64xf32>
    %c0_15 = arith.constant 0 : index
    %c0_16 = arith.constant 0 : index
    %32 = vector.load %arg4[%c0_15, %c0_16] : memref<1x64xf32, #tpu.memory_space<vmem>>, vector<1x64xf32>
    %33 = vector.broadcast %32 : vector<1x64xf32> to vector<144x64xf32>
    %34 = arith.addf %31, %33 : vector<144x64xf32>
    %35 = arith.truncf %34 : vector<144x64xf32> to vector<144x64xbf16>
    %c0_17 = arith.constant 0 : index
    %c0_18 = arith.constant 0 : index
    %c0_19 = arith.constant 0 : index
    %36 = vector.load %arg6[%c0_17, %c0_18, %c0_19] : memref<3x80x144xbf16, #tpu.memory_space<vmem>>, vector<1x80x144xbf16>
    %37 = vector.shape_cast %36 : vector<1x80x144xbf16> to vector<80x144xbf16>
    %cst_20 = arith.constant dense<0.000000e+00> : vector<80x64xf32>
    %38 = tpu.matmul %37, %35, %cst_20 {dimension_numbers = #tpu.dot_dimension_numbers<[1], [0], [0], [1], [0, 0, 1, 1], [], []>} : vector<80x144xbf16>, vector<144x64xbf16>, vector<80x64xf32> -> vector<80x64xf32>
    %c1 = arith.constant 1 : index
    %c0_21 = arith.constant 0 : index
    %c0_22 = arith.constant 0 : index
    %39 = vector.load %arg6[%c1, %c0_21, %c0_22] : memref<3x80x144xbf16, #tpu.memory_space<vmem>>, vector<1x80x144xbf16>
    %40 = vector.shape_cast %39 : vector<1x80x144xbf16> to vector<80x144xbf16>
    %cst_23 = arith.constant dense<0.000000e+00> : vector<80x64xf32>
    %41 = tpu.matmul %40, %35, %cst_23 {dimension_numbers = #tpu.dot_dimension_numbers<[1], [0], [0], [1], [0, 0, 1, 1], [], []>} : vector<80x144xbf16>, vector<144x64xbf16>, vector<80x64xf32> -> vector<80x64xf32>
    %42 = arith.maximumf %38, %41 : vector<80x64xf32>
    %c2 = arith.constant 2 : index
    %c0_24 = arith.constant 0 : index
    %c0_25 = arith.constant 0 : index
    %43 = vector.load %arg6[%c2, %c0_24, %c0_25] : memref<3x80x144xbf16, #tpu.memory_space<vmem>>, vector<1x80x144xbf16>
    %44 = vector.shape_cast %43 : vector<1x80x144xbf16> to vector<80x144xbf16>
    %cst_26 = arith.constant dense<0.000000e+00> : vector<80x64xf32>
    %45 = tpu.matmul %44, %35, %cst_26 {dimension_numbers = #tpu.dot_dimension_numbers<[1], [0], [0], [1], [0, 0, 1, 1], [], []>} : vector<80x144xbf16>, vector<144x64xbf16>, vector<80x64xf32> -> vector<80x64xf32>
    %46 = arith.maximumf %42, %45 : vector<80x64xf32>
    %c0_27 = arith.constant 0 : index
    %c0_28 = arith.constant 0 : index
    %47 = vector.load %arg23[%c0_27, %c0_28] : memref<88x64xf32, #tpu.memory_space<vmem>>, vector<80x64xf32>
    tpu.vector_store %arg23[%c0_27, %c0_28], %46 {strides = array<i32>} : memref<88x64xf32, #tpu.memory_space<vmem>>, vector<80x64xf32>,
    %cst_29 = arith.constant 0.000000e+00 : f32
    %48 = vector.broadcast %cst_29 : f32 to vector<8x64xf32>
    %c80 = arith.constant 80 : index
    %c0_30 = arith.constant 0 : index
    %49 = vector.load %arg23[%c80, %c0_30] : memref<88x64xf32, #tpu.memory_space<vmem>>, vector<8x64xf32>
    tpu.vector_store %arg23[%c80, %c0_30], %48 {strides = array<i32>} : memref<88x64xf32, #tpu.memory_space<vmem>>, vector<8x64xf32>,
    %c0_31 = arith.constant 0 : index
    %c0_32 = arith.constant 0 : index
    %50 = vector.load %arg23[%c0_31, %c0_32] : memref<88x64xf32, #tpu.memory_space<vmem>>, vector<80x64xf32>
    %c1_33 = arith.constant 1 : index
    %c0_34 = arith.constant 0 : index
    %51 = vector.load %arg23[%c1_33, %c0_34] : memref<88x64xf32, #tpu.memory_space<vmem>>, vector<80x64xf32>
    %c2_35 = arith.constant 2 : index
    %c0_36 = arith.constant 0 : index
    %52 = vector.load %arg23[%c2_35, %c0_36] : memref<88x64xf32, #tpu.memory_space<vmem>>, vector<80x64xf32>
    %c3 = arith.constant 3 : index
    %c0_37 = arith.constant 0 : index
    %53 = vector.load %arg23[%c3, %c0_37] : memref<88x64xf32, #tpu.memory_space<vmem>>, vector<80x64xf32>
    %c4 = arith.constant 4 : index
    %c0_38 = arith.constant 0 : index
    %54 = vector.load %arg23[%c4, %c0_38] : memref<88x64xf32, #tpu.memory_space<vmem>>, vector<80x64xf32>
    %c5 = arith.constant 5 : index
    %c0_39 = arith.constant 0 : index
    %55 = vector.load %arg23[%c5, %c0_39] : memref<88x64xf32, #tpu.memory_space<vmem>>, vector<80x64xf32>
    %56 = tpu.concatenate %50, %51, %52, %53, %54, %55 in 1 : vector<80x64xf32>, vector<80x64xf32>, vector<80x64xf32>, vector<80x64xf32>, vector<80x64xf32>, vector<80x64xf32> -> vector<80x384xf32>
    %57 = arith.truncf %56 : vector<80x384xf32> to vector<80x384xbf16>
    %c0_40 = arith.constant 0 : index
    %c0_41 = arith.constant 0 : index
    %58 = vector.load %arg7[%c0_40, %c0_41] : memref<384x64xbf16, #tpu.memory_space<vmem>>, vector<384x64xbf16>
    %cst_42 = arith.constant dense<0.000000e+00> : vector<80x64xf32>
    %59 = tpu.matmul %57, %58, %cst_42 {dimension_numbers = #tpu.dot_dimension_numbers<[1], [0], [0], [1], [0, 0, 1, 1], [], []>} : vector<80x384xbf16>, vector<384x64xbf16>, vector<80x64xf32> -> vector<80x64xf32>
    %c0_43 = arith.constant 0 : index
    %c0_44 = arith.constant 0 : index
    %60 = vector.load %arg8[%c0_43, %c0_44] : memref<1x64xf32, #tpu.memory_space<vmem>>, vector<1x64xf32>
    %61 = vector.broadcast %60 : vector<1x64xf32> to vector<80x64xf32>
    %62 = arith.addf %59, %61 : vector<80x64xf32>
    %cst_45 = arith.constant 0.000000e+00 : f32
    %63 = vector.broadcast %cst_45 : f32 to vector<80x64xf32>
    %64 = arith.maximumf %62, %63 : vector<80x64xf32>
    %c0_46 = arith.constant 0 : index
    %c0_47 = arith.constant 0 : index
    %65 = vector.load %arg11[%c0_46, %c0_47] : memref<80x1xf32, #tpu.memory_space<vmem>>, vector<80x1xf32>
    %66 = vector.broadcast %65 : vector<80x1xf32> to vector<80x64xf32>
    %67 = arith.mulf %64, %66 : vector<80x64xf32>
    %cst_48 = arith.constant dense<0.000000e+00> : vector<64xf32>
    %68 = vector.multi_reduction <add>, %67, %cst_48 [0] : vector<80x64xf32> to vector<64xf32>
    %69 = vector.shape_cast %68 : vector<64xf32> to vector<1x64xf32>
    %cst_49 = arith.constant 0.0151515156 : f32
    %70 = vector.broadcast %cst_49 : f32 to vector<1x64xf32>
    %71 = arith.mulf %69, %70 : vector<1x64xf32>
    %72 = vector.broadcast %71 : vector<1x64xf32> to vector<80x64xf32>
    %73 = arith.subf %64, %72 : vector<80x64xf32>
    %74 = arith.mulf %73, %73 : vector<80x64xf32>
    %75 = vector.broadcast %65 : vector<80x1xf32> to vector<80x64xf32>
    %76 = arith.mulf %74, %75 : vector<80x64xf32>
    %cst_50 = arith.constant dense<0.000000e+00> : vector<64xf32>
    %77 = vector.multi_reduction <add>, %76, %cst_50 [0] : vector<80x64xf32> to vector<64xf32>
    %78 = vector.shape_cast %77 : vector<64xf32> to vector<1x64xf32>
    %cst_51 = arith.constant 0.0151515156 : f32
    %79 = vector.broadcast %cst_51 : f32 to vector<1x64xf32>
    %80 = arith.mulf %78, %79 : vector<1x64xf32>
    %cst_52 = arith.constant 9.99999974E-6 : f32
    %81 = vector.broadcast %cst_52 : f32 to vector<1x64xf32>
    %82 = arith.addf %80, %81 : vector<1x64xf32>
    %83 = math.rsqrt %82 : vector<1x64xf32>
    %84 = vector.broadcast %83 : vector<1x64xf32> to vector<80x64xf32>
    %85 = arith.mulf %73, %84 : vector<80x64xf32>
    %c0_53 = arith.constant 0 : index
    %c0_54 = arith.constant 0 : index
    %86 = vector.load %arg9[%c0_53, %c0_54] : memref<1x64xf32, #tpu.memory_space<vmem>>, vector<1x64xf32>
    %87 = vector.broadcast %86 : vector<1x64xf32> to vector<80x64xf32>
    %88 = arith.mulf %85, %87 : vector<80x64xf32>
    %c0_55 = arith.constant 0 : index
    %c0_56 = arith.constant 0 : index
    %89 = vector.load %arg10[%c0_55, %c0_56] : memref<1x64xf32, #tpu.memory_space<vmem>>, vector<1x64xf32>
    %90 = vector.broadcast %89 : vector<1x64xf32> to vector<80x64xf32>
    %91 = arith.addf %88, %90 : vector<80x64xf32>
    %92 = arith.truncf %91 : vector<80x64xf32> to vector<80x64xbf16>
    %c0_57 = arith.constant 0 : index
    %c0_58 = arith.constant 0 : index
    %c0_59 = arith.constant 0 : index
    %93 = vector.load %arg12[%c0_57, %c0_58, %c0_59] : memref<3x32x80xbf16, #tpu.memory_space<vmem>>, vector<1x32x80xbf16>
    %94 = vector.shape_cast %93 : vector<1x32x80xbf16> to vector<32x80xbf16>
    %cst_60 = arith.constant dense<0.000000e+00> : vector<32x64xf32>
    %95 = tpu.matmul %94, %92, %cst_60 {dimension_numbers = #tpu.dot_dimension_numbers<[1], [0], [0], [1], [0, 0, 1, 1], [], []>} : vector<32x80xbf16>, vector<80x64xbf16>, vector<32x64xf32> -> vector<32x64xf32>
    %c1_61 = arith.constant 1 : index
    %c0_62 = arith.constant 0 : index
    %c0_63 = arith.constant 0 : index
    %96 = vector.load %arg12[%c1_61, %c0_62, %c0_63] : memref<3x32x80xbf16, #tpu.memory_space<vmem>>, vector<1x32x80xbf16>
    %97 = vector.shape_cast %96 : vector<1x32x80xbf16> to vector<32x80xbf16>
    %cst_64 = arith.constant dense<0.000000e+00> : vector<32x64xf32>
    %98 = tpu.matmul %97, %92, %cst_64 {dimension_numbers = #tpu.dot_dimension_numbers<[1], [0], [0], [1], [0, 0, 1, 1], [], []>} : vector<32x80xbf16>, vector<80x64xbf16>, vector<32x64xf32> -> vector<32x64xf32>
    %99 = arith.maximumf %95, %98 : vector<32x64xf32>
    %c2_65 = arith.constant 2 : index
    %c0_66 = arith.constant 0 : index
    %c0_67 = arith.constant 0 : index
    %100 = vector.load %arg12[%c2_65, %c0_66, %c0_67] : memref<3x32x80xbf16, #tpu.memory_space<vmem>>, vector<1x32x80xbf16>
    %101 = vector.shape_cast %100 : vector<1x32x80xbf16> to vector<32x80xbf16>
    %cst_68 = arith.constant dense<0.000000e+00> : vector<32x64xf32>
    %102 = tpu.matmul %101, %92, %cst_68 {dimension_numbers = #tpu.dot_dimension_numbers<[1], [0], [0], [1], [0, 0, 1, 1], [], []>} : vector<32x80xbf16>, vector<80x64xbf16>, vector<32x64xf32> -> vector<32x64xf32>
    %103 = arith.maximumf %99, %102 : vector<32x64xf32>
    %104 = arith.truncf %103 : vector<32x64xf32> to vector<32x64xbf16>
    %c0_69 = arith.constant 0 : index
    %c0_70 = arith.constant 0 : index
    %105 = vector.load %arg13[%c0_69, %c0_70] : memref<64x1024xbf16, #tpu.memory_space<vmem>>, vector<64x1024xbf16>
    %cst_71 = arith.constant dense<0.000000e+00> : vector<32x1024xf32>
    %106 = tpu.matmul %104, %105, %cst_71 {dimension_numbers = #tpu.dot_dimension_numbers<[1], [0], [0], [1], [0, 0, 1, 1], [], []>} : vector<32x64xbf16>, vector<64x1024xbf16>, vector<32x1024xf32> -> vector<32x1024xf32>
    %c0_72 = arith.constant 0 : index
    %c0_73 = arith.constant 0 : index
    %107 = vector.load %arg14[%c0_72, %c0_73] : memref<32x1024xf32, #tpu.memory_space<vmem>>, vector<32x1024xf32>
    %108 = arith.mulf %106, %107 : vector<32x1024xf32>
    %109 = arith.truncf %108 : vector<32x1024xf32> to vector<32x1024xbf16>
    %c0_74 = arith.constant 0 : index
    %c0_75 = arith.constant 0 : index
    %110 = vector.load %arg15[%c0_74, %c0_75] : memref<2x32xbf16, #tpu.memory_space<vmem>>, vector<2x32xbf16>
    %cst_76 = arith.constant dense<0.000000e+00> : vector<2x1024xf32>
    %111 = tpu.matmul %110, %109, %cst_76 {dimension_numbers = #tpu.dot_dimension_numbers<[1], [0], [0], [1], [0, 0, 1, 1], [], []>} : vector<2x32xbf16>, vector<32x1024xbf16>, vector<2x1024xf32> -> vector<2x1024xf32>
    %112 = arith.truncf %111 : vector<2x1024xf32> to vector<2x1024xbf16>
    %c0_77 = arith.constant 0 : index
    %c0_78 = arith.constant 0 : index
    %113 = vector.load %arg16[%c0_77, %c0_78] : memref<1024x64xbf16, #tpu.memory_space<vmem>>, vector<1024x64xbf16>
    %cst_79 = arith.constant dense<0.000000e+00> : vector<2x64xf32>
    %114 = tpu.matmul %112, %113, %cst_79 {dimension_numbers = #tpu.dot_dimension_numbers<[1], [0], [0], [1], [0, 0, 1, 1], [], []>} : vector<2x1024xbf16>, vector<1024x64xbf16>, vector<2x64xf32> -> vector<2x64xf32>
    %c0_80 = arith.constant 0 : index
    %c0_81 = arith.constant 0 : index
    %115 = vector.load %arg17[%c0_80, %c0_81] : memref<1x64xf32, #tpu.memory_space<vmem>>, vector<1x64xf32>
    %116 = vector.broadcast %115 : vector<1x64xf32> to vector<2x64xf32>
    %117 = arith.addf %114, %116 : vector<2x64xf32>
    %cst_82 = arith.constant 0.000000e+00 : f32
    %118 = vector.broadcast %cst_82 : f32 to vector<2x64xf32>
    %119 = arith.maximumf %117, %118 : vector<2x64xf32>
    %120 = arith.truncf %119 : vector<2x64xf32> to vector<2x64xbf16>
    %c0_83 = arith.constant 0 : index
    %c0_84 = arith.constant 0 : index
    %121 = vector.load %arg18[%c0_83, %c0_84] : memref<64x32xbf16, #tpu.memory_space<vmem>>, vector<64x32xbf16>
    %cst_85 = arith.constant dense<0.000000e+00> : vector<2x32xf32>
    %122 = tpu.matmul %120, %121, %cst_85 {dimension_numbers = #tpu.dot_dimension_numbers<[1], [0], [0], [1], [0, 0, 1, 1], [], []>} : vector<2x64xbf16>, vector<64x32xbf16>, vector<2x32xf32> -> vector<2x32xf32>
    %c0_86 = arith.constant 0 : index
    %c0_87 = arith.constant 0 : index
    %123 = vector.load %arg19[%c0_86, %c0_87] : memref<1x32xf32, #tpu.memory_space<vmem>>, vector<1x32xf32>
    %124 = vector.broadcast %123 : vector<1x32xf32> to vector<2x32xf32>
    %125 = arith.addf %122, %124 : vector<2x32xf32>
    %cst_88 = arith.constant 0.000000e+00 : f32
    %126 = vector.broadcast %cst_88 : f32 to vector<2x32xf32>
    %127 = arith.maximumf %125, %126 : vector<2x32xf32>
    %128 = arith.truncf %127 : vector<2x32xf32> to vector<2x32xbf16>
    %c0_89 = arith.constant 0 : index
    %c0_90 = arith.constant 0 : index
    %129 = vector.load %arg20[%c0_89, %c0_90] : memref<32x1xbf16, #tpu.memory_space<vmem>>, vector<32x1xbf16>
    %cst_91 = arith.constant dense<0.000000e+00> : vector<2x1xf32>
    %130 = tpu.matmul %128, %129, %cst_91 {dimension_numbers = #tpu.dot_dimension_numbers<[1], [0], [0], [1], [0, 0, 1, 1], [], []>} : vector<2x32xbf16>, vector<32x1xbf16>, vector<2x1xf32> -> vector<2x1xf32>
    %c0_92 = arith.constant 0 : index
    %c0_93 = arith.constant 0 : index
    %131 = vector.load %arg21[%c0_92, %c0_93] : memref<1x1xf32, #tpu.memory_space<vmem>>, vector<1x1xf32>
    %132 = vector.broadcast %131 : vector<1x1xf32> to vector<2x1xf32>
    %133 = arith.addf %130, %132 : vector<2x1xf32>
    %c0_94 = arith.constant 0 : index
    %c0_95 = arith.constant 0 : index
    %134 = vector.load %arg22[%c0_94, %c0_95] : memref<2x1xf32, #tpu.memory_space<vmem>>, vector<2x1xf32>
    tpu.vector_store %arg22[%c0_94, %c0_95], %133 {strides = array<i32>} : memref<2x1xf32, #tpu.memory_space<vmem>>, vector<2x1xf32>,
    return
  }
}

</mosaic_0001>

<bundles_post_ra>
// kernel: discriminator_forward.1
= control target key start
LH: loop header
LB: loop body
LE: loop exit
PB: predicated region body
PF: predicated region fallthrough
CT: control target
= control target key end

     0   :  { %vm173_vm0 = vcmask 1043456   ;;  %v6116_v0 = vmov 0.0   ;;  %vm4428_vm1 = vmmov 0   ;;  %vm145_vm2 = vcmask 64512   ;;  %s6090_s1 = inlined_call_operand.vmem [shape: bf16[8,64], index: 1, kind: input, shape index: {}]   ;;  %s6091_s0 = inlined_call_operand.vmem [shape: bf16[144,8], index: 0, kind: input, shape index: {}]   ;;  %s6092_s5 = inlined_call_operand.vmem [shape: f32[144,1], index: 5, kind: input, shape index: {}]   ;;  %s6093_s2 = inlined_call_operand.vmem [shape: f32[1,64], index: 2, kind: input, shape index: {}]   ;;  %s6094_s6 = inlined_call_operand.vmem [shape: bf16[3,80,144], index: 6, kind: input, shape index: {}]   ;;  %s6095_s3 = inlined_call_operand.vmem [shape: f32[1,64], index: 3, kind: input, shape index: {}]   ;;  %s6096_s4 = inlined_call_operand.vmem [shape: f32[1,64], index: 4, kind: input, shape index: {}]   ;;  %s6097_s7 = inlined_call_operand.vmem [shape: bf16[384,64], index: 7, kind: input, shape index: {}]   ;;  %s6098_s11 = inlined_call_operand.vmem [shape: f32[80,1], index: 11, kind: input, shape index: {}]   ;;  %s6099_s8 = inlined_call_operand.vmem [shape: f32[1,64], index: 8, kind: input, shape index: {}]   ;;  %s6100_s12 = inlined_call_operand.vmem [shape: bf16[3,32,80], index: 12, kind: input, shape index: {}]   ;;  %s6101_s9 = inlined_call_operand.vmem [shape: f32[1,64], index: 9, kind: input, shape index: {}]   ;;  %s6102_s10 = inlined_call_operand.vmem [shape: f32[1,64], index: 10, kind: input, shape index: {}]   ;;  %s6103_s13 = inlined_call_operand.vmem [shape: bf16[64,1024], index: 13, kind: input, shape index: {}]   ;;  %s6104_s16 = inlined_call_operand.vmem [shape: bf16[1024,64], index: 16, kind: input, shape index: {}]   ;;  %s6105_s14 = inlined_call_operand.vmem [shape: f32[32,1024], index: 14, kind: input, shape index: {}]   ;;  %s6106_s15 = inlined_call_operand.vmem [shape: bf16[2,32], index: 15, kind: input, shape index: {}]   ;;  %s6107_s18 = inlined_call_operand.vmem [shape: bf16[64,32], index: 18, kind: input, shape index: {}]   ;;  %s6108_s17 = inlined_call_operand.vmem [shape: f32[1,64], index: 17, kind: input, shape index: {}]   ;;  %s6109_s20 = inlined_call_operand.vmem [shape: bf16[32,1], index: 20, kind: input, shape index: {}]   ;;  %s6110_s21 = inlined_call_operand.<no memory space> [shape: f32[1,1], index: 21, kind: input, shape index: {}]   ;;  %s6111_s19 = inlined_call_operand.vmem [shape: f32[1,32], index: 19, kind: input, shape index: {}]   ;;  %s6112_s22 = inlined_call_operand.vmem [shape: f32[2,1], index: 22, kind: output, shape index: {}]  }
   0x1   :  { %6125 = sst [smem:[#allocation4_spill]] %s6090_s1  ;;  %4052 = vmatprep.subr.bf16.mxu0 %v6116_v0  ;;  %4054 = vmatprep.mubr.msk.bf16.mxu0 %vm4428_vm1, %v6116_v0  ;;  %v6118_v4 = vmov 0   ;;  %vm426_vm3 = vcmask 523264   ;;  %vm699_vm4 = vcmask 130048   ;;  %vm1904_vm5 = vcmask 654336  }
   0x2   :  { %6126 = sst [smem:[#allocation5_spill]] %s6091_s0  ;;  %4192 = vset.pattern.permute.xlu0 %v6118_v4  ;;  %4193 = vset.pattern.permute.xlu1 %v6118_v4  ;;  %1106 = vst.msk [vmem:[#allocation2 + $0x50] sm:$0xff] %vm426_vm3, %v6116_v0  ;;  %vm2601_vm6 = vcmask 261120   ;;  %vm3608_vm7 = vcmask 1024  }
   0x3   :  { %6127 = sst [smem:[#allocation6_spill]] %s6092_s5  ;;  %715 = vmatprep.subr.bf16.mxu1 %v6118_v4 }
   0x4   :  { %6128 = sst [smem:[#allocation7_spill]] %s6093_s2 }
   0x5   :  { %6129 = sst [smem:[#allocation8_spill]] %s6094_s6 }
   0x6   :  { %6130 = sst [smem:[#allocation9_spill]] %s6095_s3 }
   0x7   :  { %6131 = sst [smem:[#allocation10_spill]] %s6096_s4 }
   0x8   :  { %s6132_s29 = sld [smem:[#allocation4_spill]] }
   0x9   :  { %s6133_s1 = sld [smem:[#allocation5_spill]] }
   0xa   :  { %s6134_s4 = sld [smem:[#allocation6_spill]] }
   0xb   :  { %s6135_s23 = sld [smem:[#allocation7_spill]] }
   0xc   :  { %s6136_s24 = sld [smem:[#allocation8_spill]] }
   0xd   :  { %s6142_s2 = sld [smem:[#allocation9_spill]] }
   0xe   :  { %v92_v1 = vld [vmem:[%s6132_s29] sm:$0xf]  ;;  %s6143_s29 = sld [smem:[#allocation10_spill]] }
   0xf   :  { %v175_v2 = vsel %vm173_vm0, %v92_v1, 0  ;;  %v4269_v3 = vld [vmem:[%s6133_s1] sm:$0xff]   ;;  %v4270_v5 = vld [vmem:[%s6133_s1 + $0x8] sm:$0xff]   ;;  %v4271_v12 = vld [vmem:[%s6133_s1 + $0x10] sm:$0xff]  }
  0x10   :  { %4053 = vmatpush3.bf16.msra.mxu0 %v175_v2  ;;  %v300_v6 = vld [vmem:[%s6134_s4] sm:$0xff]  ;;  %v302_v7 = vld [vmem:[%s6134_s4 + $0x10] sm:$0xff]  ;;  %v301_v8 = vld [vmem:[%s6134_s4 + $0x8] sm:$0xff] }
  0x11   :  { %859 = vmatprep.subr.bf16.mxu0 %v6118_v4  ;;  %320 = vperm.xlu0 %4192, %v300_v6   ;;  %v303_v9 = vld [vmem:[%s6134_s4 + $0x18] sm:$0xff]  ;;  %v304_v10 = vld [vmem:[%s6134_s4 + $0x20] sm:$0xff]  ;;  %v305_v11 = vld [vmem:[%s6134_s4 + $0x28] sm:$0xff] }
  0x12   :  { %330 = vperm.xlu1 %4193, %v302_v7   ;;  %v306_v13 = vld [vmem:[%s6134_s4 + $0x30] sm:$0xff]  ;;  %v307_v14 = vld [vmem:[%s6134_s4 + $0x38] sm:$0xff]  ;;  %v308_v15 = vld [vmem:[%s6134_s4 + $0x40] sm:$0xff] }
  0x13   :  { %4055 = vmatmul.mubr.msk.bf16.vlgmr.msra.gmra.mxu0 %vm145_vm2, %v4269_v3  ;;  %v309_v16 = vld [vmem:[%s6134_s4 + $0x48] sm:$0xff]  ;;  %v4272_v17 = vld [vmem:[%s6133_s1 + $0x18] sm:$0xff]   ;;  %v310_v18 = vld [vmem:[%s6134_s4 + $0x50] sm:$0xff] }
  0x14   :  { %4058 = vmatprep.mubr.msk.bf16.mxu0 %vm4428_vm1, %v6116_v0  ;;  %v311_v19 = vld [vmem:[%s6134_s4 + $0x58] sm:$0xff]  ;;  %v312_v20 = vld [vmem:[%s6134_s4 + $0x60] sm:$0xff]  ;;  %v313_v21 = vld [vmem:[%s6134_s4 + $0x68] sm:$0xff] }
  0x15   :  { %325 = vperm.xlu0 %4192, %v301_v8   ;;  %v4273_v22 = vld [vmem:[%s6133_s1 + $0x20] sm:$0xff]   ;;  %v314_v23 = vld [vmem:[%s6134_s4 + $0x70] sm:$0xff]  ;;  %v315_v24 = vld [vmem:[%s6134_s4 + $0x78] sm:$0xff] }
  0x16   :  { %335 = vperm.xlu1 %4193, %v303_v9   ;;  %v316_v25 = vld [vmem:[%s6134_s4 + $0x80] sm:$0xff]  ;;  %v317_v26 = vld [vmem:[%s6134_s4 + $0x88] sm:$0xff]  ;;  %v4275_v28 = vld [vmem:[%s6133_s1 + $0x30] sm:$0xff]  }
  0x17   :  { %v4274_v27 = vld [vmem:[%s6133_s1 + $0x28] sm:$0xff]   ;;  %v4276_v29 = vld [vmem:[%s6133_s1 + $0x38] sm:$0xff]   ;;  %v4277_v30 = vld [vmem:[%s6133_s1 + $0x40] sm:$0xff]  }
  0x18   :  { %v4673_v48 = vld [vmem:[%s6135_s23] ss:$0 sm:$0xff]  ;;  %s4430_s23 = smov 64  }
  0x19   :  { %340 = vperm.xlu0 %4192, %v304_v10  }
  0x1a   :  { %345 = vperm.xlu1 %4193, %v305_v11  }
  0x1b   :  { %4059 = vmatmul.mubr.msk.bf16.gmra.mxu0 %vm145_vm2, %v4270_v5 }
  0x1c   :  { %4062 = vmatprep.mubr.msk.bf16.mxu0 %vm4428_vm1, %v6116_v0 }
  0x1d   :  { %350 = vperm.xlu0 %4192, %v306_v13  }
  0x1e   :  { %355 = vperm.xlu1 %4193, %v307_v14  }
  0x21   :  { %360 = vperm.xlu0 %4192, %v308_v15  }
  0x22   :  { %365 = vperm.xlu1 %4193, %v309_v16  }
  0x23   :  { %4063 = vmatmul.mubr.msk.bf16.gmra.mxu0 %vm145_vm2, %v4271_v12 }
  0x24   :  { %4066 = vmatprep.mubr.msk.bf16.mxu0 %vm4428_vm1, %v6116_v0 }
  0x25   :  { %370 = vperm.xlu0 %4192, %v310_v18  }
  0x26   :  { %375 = vperm.xlu1 %4193, %v311_v19  }
  0x29   :  { %380 = vperm.xlu0 %4192, %v312_v20  }
  0x2a   :  { %385 = vperm.xlu1 %4193, %v313_v21  }
  0x2b   :  { %4067 = vmatmul.mubr.msk.bf16.gmra.mxu0 %vm145_vm2, %v4272_v17 }
  0x2c   :  { %4070 = vmatprep.mubr.msk.bf16.mxu0 %vm4428_vm1, %v6116_v0 }
  0x2d   :  { %390 = vperm.xlu0 %4192, %v314_v23  }
  0x2e   :  { %395 = vperm.xlu1 %4193, %v315_v24  }
  0x31   :  { %400 = vperm.xlu0 %4192, %v316_v25  }
  0x32   :  { %405 = vperm.xlu1 %4193, %v317_v26  }
  0x33   :  { %4071 = vmatmul.mubr.msk.bf16.gmra.mxu0 %vm145_vm2, %v4273_v22 }
  0x34   :  { %4074 = vmatprep.mubr.msk.bf16.mxu0 %vm4428_vm1, %v6116_v0 }
  0x3b   :  { %4075 = vmatmul.mubr.msk.bf16.gmra.mxu0 %vm145_vm2, %v4274_v27 }
  0x3c   :  { %4078 = vmatprep.mubr.msk.bf16.mxu0 %vm4428_vm1, %v6116_v0 }
  0x43   :  { %4079 = vmatmul.mubr.msk.bf16.gmra.mxu0 %vm145_vm2, %v4275_v28 }
  0x44   :  { %4082 = vmatprep.mubr.msk.bf16.mxu0 %vm4428_vm1, %v6116_v0 }
  0x4b   :  { %4083 = vmatmul.mubr.msk.bf16.gmra.mxu0 %vm145_vm2, %v4276_v29 }
  0x4c   :  { %4086 = vmatprep.mubr.msk.bf16.mxu0 %vm4428_vm1, %v6116_v0 }
  0x53   :  { %4087 = vmatmul.mubr.msk.bf16.gmra.mxu0 %vm145_vm2, %v4277_v30 }
  0x8c   :  { %v4664_v41 = vpop.permute.xlu0 %320 }
  0x8d   :  { %v4666_v43 = vpop.permute.xlu1 %330 }
  0x90   :  { %v4668_v46 = vpop.permute.xlu0 %325 }
  0x91   :  { %v4675_v49 = vpop.permute.xlu1 %335 }
  0x94   :  { %v4686_v55 = vpop.permute.xlu0 %340 }
  0x95   :  { %v4693_v60 = vpop.permute.xlu1 %345 }
  0x98   :  { %v4709_v7 = vpop.permute.xlu0 %350 }
  0x99   :  { %v4718_v12 = vpop.permute.xlu1 %355 }
  0x9c   :  { %v4737_v25 = vpop.permute.xlu0 %360 }
  0xd3   :  { %v211_v31 = vpop.f32.mrf.mxu0 }
  0xd4   :  { %v4681_v52 = vadd.f32 %v4673_v48, %v211_v31 }
  0xd5   :  { %v4056_v32 = vpop.f32.mrf.mxu0 }
  0xd6   :  { %v282_v59 = vmax.f32 %v4681_v52, 0.0  ;;  %v4747_v32 = vpop.permute.xlu1 %365 }
  0xd7   :  { %v214_v33 = vpop.f32.mrf.mxu0 }
  0xd8   :  { %v4678_v51 = vadd.f32 %v4673_v48, %v214_v33  ;;  %v408_v6 = vmul.f32 %v4664_v41, %v282_v59 }
  0xd9   :  { %v4057_v34 = vpop.f32.mrf.mxu0 }
  0xda   :  { %v283_v57 = vmax.f32 %v4678_v51, 0.0  ;;  %v427_v18 = vsel %vm426_vm3, %v408_v6, 0.0 }
  0xdb   :  { %v219_v35 = vpop.f32.mrf.mxu0 }
  0xdc   :  { %v4684_v54 = vadd.f32 %v4673_v48, %v219_v35  ;;  %v409_v2 = vmul.f32 %v4668_v46, %v283_v57 }
  0xdd   :  { %v4060_v36 = vpop.f32.mrf.mxu0 }
  0xde   :  { %v284_v62 = vmax.f32 %v4684_v54, 0.0  ;;  %v428_v14 = vsel %vm426_vm3, %v409_v2, 0.0 }
  0xdf   :  { %v222_v37 = vpop.f32.mrf.mxu0  ;;  %v429_v24 = vadd.f32 %v428_v14, %v427_v18 }
  0xe0   :  { %v4690_v58 = vadd.f32 %v4673_v48, %v222_v37  ;;  %v410_v9 = vmul.f32 %v4666_v43, %v284_v62 }
  0xe1   :  { %v4061_v38 = vpop.f32.mrf.mxu0 }
  0xe2   :  { %v285_v3 = vmax.f32 %v4690_v58, 0.0  ;;  %v430_v20 = vsel %vm426_vm3, %v410_v9, 0.0 }
  0xe3   :  { %v227_v39 = vpop.f32.mrf.mxu0  ;;  %v431_v31 = vadd.f32 %v430_v20, %v429_v24 }
  0xe4   :  { %v4697_v63 = vadd.f32 %v4673_v48, %v227_v39  ;;  %v411_v15 = vmul.f32 %v4675_v49, %v285_v3 }
  0xe5   :  { %v4064_v40 = vpop.f32.mrf.mxu0 }
  0xe6   :  { %v286_v10 = vmax.f32 %v4697_v63, 0.0  ;;  %v432_v27 = vsel %vm426_vm3, %v411_v15, 0.0 }
  0xe7   :  { %v230_v42 = vpop.f32.mrf.mxu0  ;;  %v433_v38 = vadd.f32 %v432_v27, %v431_v31 }
  0xe8   :  { %v4704_v5 = vadd.f32 %v4673_v48, %v230_v42  ;;  %v412_v21 = vmul.f32 %v4686_v55, %v286_v10 }
  0xe9   :  { %v4065_v44 = vpop.f32.mrf.mxu0 }
  0xea   :  { %v287_v16 = vmax.f32 %v4704_v5, 0.0  ;;  %v434_v34 = vsel %vm426_vm3, %v412_v21, 0.0 }
  0xeb   :  { %v235_v45 = vpop.f32.mrf.mxu0 }
  0xec   :  { %v4716_v11 = vadd.f32 %v4673_v48, %v235_v45  ;;  %v413_v28 = vmul.f32 %v4693_v60, %v287_v16 }
  0xed   :  { %v4068_v47 = vpop.f32.mrf.mxu0 }
  0xee   :  { %v288_v22 = vmax.f32 %v4716_v11, 0.0  ;;  %v436_v40 = vsel %vm426_vm3, %v413_v28, 0.0  ;;  %v435_v47 = vadd.f32 %v434_v34, %v433_v38 }
  0xef   :  { %v238_v50 = vpop.f32.mrf.mxu0 }
  0xf0   :  { %v4726_v17 = vadd.f32 %v4673_v48, %v238_v50  ;;  %v414_v35 = vmul.f32 %v4709_v7, %v288_v22  ;;  %v4765_v50 = vpop.permute.xlu0 %370  ;;  %v437_v6 = vadd.f32 %v436_v40, %v435_v47 }
  0xf1   :  { %v4069_v53 = vpop.f32.mrf.mxu0 }
  0xf2   :  { %v289_v29 = vmax.f32 %v4726_v17, 0.0 }
  0xf3   :  { %v243_v56 = vpop.f32.mrf.mxu0 }
  0xf4   :  { %v4735_v23 = vadd.f32 %v4673_v48, %v243_v56  ;;  %v415_v42 = vmul.f32 %v4718_v12, %v289_v29  ;;  %v438_v56 = vsel %vm426_vm3, %v414_v35, 0.0  ;;  %v4790_v27 = vpop.permute.xlu0 %380 }
  0xf5   :  { %v4072_v61 = vpop.f32.mrf.mxu0 }
  0xf6   :  { %v290_v36 = vmax.f32 %v4735_v23, 0.0 }
  0xf7   :  { %v246_v1 = vpop.f32.mrf.mxu0 }
  0xf8   :  { %v4745_v30 = vadd.f32 %v4673_v48, %v246_v1  ;;  %v416_v61 = vmul.f32 %v4737_v25, %v290_v36 }
  0xf9   :  { %v4073_v8 = vpop.f32.mrf.mxu0 }
  0xfa   :  { %v291_v44 = vmax.f32 %v4745_v30, 0.0  ;;  %v4775_v8 = vpop.permute.xlu1 %375  ;;  %v442_v21 = vsel %vm426_vm3, %v416_v61, 0.0 }
  0xfb   :  { %v251_v13 = vpop.f32.mrf.mxu0 }
  0xfc   :  { %v4755_v37 = vadd.f32 %v4673_v48, %v251_v13  ;;  %v440_v13 = vsel %vm426_vm3, %v415_v42, 0.0  ;;  %v417_v14 = vmul.f32 %v4747_v32, %v291_v44 }
  0xfd   :  { %v4076_v19 = vpop.f32.mrf.mxu0 }
  0xfe   :  { %v292_v1 = vmax.f32 %v4755_v37, 0.0  ;;  %v439_v19 = vadd.f32 %v438_v56, %v437_v6 }
  0xff   :  { %v254_v26 = vpop.f32.mrf.mxu0 }
 0x100   :  { %v4763_v45 = vadd.f32 %v4673_v48, %v254_v26  ;;  %v418_v24 = vmul.f32 %v4765_v50, %v292_v1  ;;  %v441_v28 = vadd.f32 %v440_v13, %v439_v19  ;;  %v4814_v19 = vpop.permute.xlu0 %390 }
 0x101   :  { %v4077_v33 = vpop.f32.mrf.mxu0 }
 0x102   :  { %v293_v15 = vmax.f32 %v4763_v45, 0.0  ;;  %v444_v33 = vsel %vm426_vm3, %v417_v14, 0.0  ;;  %v443_v40 = vadd.f32 %v442_v21, %v441_v28  ;;  %v446_v47 = vsel %vm426_vm3, %v418_v24, 0.0 }
 0x103   :  { %v259_v39 = vpop.f32.mrf.mxu0 }
 0x104   :  { %v4773_v2 = vadd.f32 %v4673_v48, %v259_v39  ;;  %v419_v34 = vmul.f32 %v4775_v8, %v293_v15  ;;  %v4800_v39 = vpop.permute.xlu1 %385  ;;  %v445_v61 = vadd.f32 %v444_v33, %v443_v40  ;;  %v4832_v4 = vpop.permute.xlu0 %400 }
 0x105   :  { %v4080_v53 = vpop.f32.mrf.mxu0 }
 0x106   :  { %v6124_v26 = vmax.f32 %v4773_v2, 0.0 }
 0x107   :  { %v262_v9 = vpop.f32.mrf.mxu0 }
 0x108   :  { %v4783_v18 = vadd.f32 %v4673_v48, %v262_v9  ;;  %v420_v53 = vmul.f32 %v4790_v27, %v6124_v26  ;;  %v448_v9 = vsel %vm426_vm3, %v419_v34, 0.0  ;;  %v4821_v33 = vpop.permute.xlu1 %395 }
 0x109   :  { %v4081_v20 = vpop.f32.mrf.mxu0 }
 0x10a   :  { %v6122_v35 = vmax.f32 %v4783_v18, 0.0  ;;  %v447_v20 = vadd.f32 %v446_v47, %v445_v61  ;;  %v450_v24 = vsel %vm426_vm3, %v420_v53, 0.0 }
 0x10b   :  { %v267_v31 = vpop.f32.mrf.mxu0 }
 0x10c   :  { %v4798_v38 = vadd.f32 %v4673_v48, %v267_v31  ;;  %v421_v13 = vmul.f32 %v4800_v39, %v6122_v35  ;;  %v449_v34 = vadd.f32 %v448_v9, %v447_v20 }
 0x10d   :  { %v4084_v42 = vpop.f32.mrf.mxu0 }
 0x10e   :  { %v6120_v56 = vmax.f32 %v4798_v38, 0.0  ;;  %v452_v42 = vsel %vm426_vm3, %v421_v13, 0.0  ;;  %v451_v53 = vadd.f32 %v450_v24, %v449_v34 }
 0x10f   :  { %v270_v6 = vpop.f32.mrf.mxu0 }
 0x110   :  { %v4812_v14 = vadd.f32 %v4673_v48, %v270_v6  ;;  %v422_v28 = vmul.f32 %v4814_v19, %v6120_v56  ;;  %v453_v56 = vadd.f32 %v452_v42, %v451_v53 }
 0x111   :  { %v4085_v21 = vpop.f32.mrf.mxu0 }
 0x112   :  { %v6121_v31 = vmax.f32 %v4812_v14, 0.0  ;;  %v454_v21 = vsel %vm426_vm3, %v422_v28, 0.0 }
 0x113   :  { %v275_v40 = vpop.f32.mrf.mxu0 }
 0x114   :  { %v423_v6 = vmul.f32 %v4821_v33, %v6121_v31  ;;  %v4828_v47 = vadd.f32 %v4673_v48, %v275_v40  ;;  %v455_v40 = vadd.f32 %v454_v21, %v453_v56  ;;  %v4280_v21 = vld [vmem:[%s6136_s24 + $0x4] ss:$8 sps:$4 sm:$0xff]  }
 0x115   :  { %v4088_v61 = vpop.f32.mrf.mxu0  ;;  %3645 = vmatprep.mubr.msk.bf16.mxu1 %vm699_vm4, %v4280_v21 }
 0x116   :  { %v6123_v0 = vmax.f32 %v4828_v47, 0.0  ;;  %v456_v20 = vsel %vm426_vm3, %v423_v6, 0.0  ;;  %v4843_v61 = vpop.permute.xlu1 %405 }
 0x117   :  { %v278_v9 = vpop.f32.mrf.mxu0  ;;  %v457_v35 = vadd.f32 %v456_v20, %v455_v40  ;;  %v4283_v20 = vld [vmem:[%s6136_s24 + $0x54] ss:$8 sps:$4 sm:$0xff]  }
 0x118   :  { %v424_v13 = vmul.f32 %v4832_v4, %v6123_v0  ;;  %v4839_v31 = vadd.f32 %v4673_v48, %v278_v9  ;;  %3670 = vmatprep.mubr.msk.bf16.mxu0 %vm699_vm4, %v4283_v20 }
 0x119   :  { %v4089_v24 = vpop.f32.mrf.mxu0 }
 0x11a   :  { %v458_v34 = vsel %vm426_vm3, %v424_v13, 0.0  ;;  %v299_v28 = vmax.f32 %v4839_v31, 0.0 }
 0x11b   :  { %v459_v6 = vadd.f32 %v458_v34, %v457_v35 }
 0x11c   :  { %v425_v42 = vmul.f32 %v4843_v61, %v299_v28 }
 0x11e   :  { %v460_v53 = vsel %vm426_vm3, %v425_v42, 0.0 }
 0x11f   :  { %v461_v0 = vadd.f32 %v460_v53, %v459_v6 }
 0x121   :  { %v462_v26 = vrot.slane %v461_v0, 4 }
 0x123   :  { %v463_v48 = vadd.f32 %v462_v26, %v461_v0 }
 0x125   :  { %v464_v9 = vrot.slane %v463_v48, 2 }
 0x127   :  { %v465_v56 = vadd.f32 %v464_v9, %v463_v48 }
 0x129   :  { %v466_v13 = vrot.slane %v465_v56, 1 }
 0x12b   :  { %v467_v35 = vadd.f32 %v466_v13, %v465_v56 }
 0x12d   :  { %v4857_v40 = vmul.f32 0.007246377, %v467_v35  ;;  %v6137_v35 = vmax.f32 %v4773_v2, 0.0 }
 0x12f   :  { %v4862_v0 = vsub.f32 %v282_v59, %v4857_v40  ;;  %v4867_v26 = vsub.f32 %v283_v57, %v4857_v40  ;;  %v4872_v24 = vsub.f32 %v284_v62, %v4857_v40  ;;  %v4877_v34 = vsub.f32 %v285_v3, %v4857_v40 }
 0x130   :  { %v4886_v51 = vsub.f32 %v286_v10, %v4857_v40  ;;  %v4893_v57 = vsub.f32 %v287_v16, %v4857_v40  ;;  %v4902_v63 = vsub.f32 %v288_v22, %v4857_v40  ;;  %v4910_v5 = vsub.f32 %v289_v29, %v4857_v40 }
 0x131   :  { %v487_v52 = vmul.f32 %v4862_v0, %v4862_v0  ;;  %v488_v59 = vmul.f32 %v4867_v26, %v4867_v26  ;;  %v489_v54 = vmul.f32 %v4872_v24, %v4872_v24  ;;  %v490_v58 = vmul.f32 %v4877_v34, %v4877_v34 }
 0x132   :  { %v491_v10 = vmul.f32 %v4886_v51, %v4886_v51  ;;  %v4920_v6 = vsub.f32 %v290_v36, %v4857_v40  ;;  %v494_v48 = vmul.f32 %v4910_v5, %v4910_v5 }
 0x133   :  { %v505_v62 = vmul.f32 %v487_v52, %v4664_v41  ;;  %v506_v3 = vmul.f32 %v488_v59, %v4668_v46  ;;  %v507_v42 = vmul.f32 %v489_v54, %v4666_v43  ;;  %v492_v41 = vmul.f32 %v4893_v57, %v4893_v57 }
 0x134   :  { %v508_v46 = vmul.f32 %v490_v58, %v4675_v49  ;;  %v493_v43 = vmul.f32 %v4902_v63, %v4902_v63  ;;  %v509_v17 = vmul.f32 %v491_v10, %v4686_v55  ;;  %v4929_v49 = vsub.f32 %v291_v44, %v4857_v40 }
 0x135   :  { %v523_v16 = vsel %vm426_vm3, %v505_v62, 0.0  ;;  %v524_v11 = vsel %vm426_vm3, %v506_v3, 0.0  ;;  %v526_v29 = vsel %vm426_vm3, %v507_v42, 0.0  ;;  %v510_v23 = vmul.f32 %v492_v41, %v4693_v60 }
 0x136   :  { %v525_v22 = vadd.f32 %v524_v11, %v523_v16  ;;  %v528_v36 = vsel %vm426_vm3, %v508_v46, 0.0  ;;  %v4938_v55 = vsub.f32 %v292_v1, %v4857_v40  ;;  %v495_v56 = vmul.f32 %v4920_v6, %v4920_v6 }
 0x137   :  { %v511_v30 = vmul.f32 %v493_v43, %v4709_v7  ;;  %v530_v44 = vsel %vm426_vm3, %v509_v17, 0.0  ;;  %v4947_v60 = vsub.f32 %v293_v15, %v4857_v40  ;;  %v496_v20 = vmul.f32 %v4929_v49, %v4929_v49 }
 0x138   :  { %v527_v53 = vadd.f32 %v526_v29, %v525_v22  ;;  %v512_v37 = vmul.f32 %v494_v48, %v4718_v12  ;;  %v532_v1 = vsel %vm426_vm3, %v510_v23, 0.0  ;;  %v4956_v7 = vsub.f32 %v6137_v35, %v4857_v40 }
 0x139   :  { %v497_v52 = vmul.f32 %v4938_v55, %v4938_v55  ;;  %v513_v45 = vmul.f32 %v495_v56, %v4737_v25  ;;  %v534_v15 = vsel %vm426_vm3, %v511_v30, 0.0  ;;  %v6138_v54 = vmax.f32 %v4783_v18, 0.0 }
 0x13a   :  { %v529_v9 = vadd.f32 %v528_v36, %v527_v53  ;;  %v498_v58 = vmul.f32 %v4947_v60, %v4947_v60  ;;  %v514_v62 = vmul.f32 %v496_v20, %v4747_v32  ;;  %v536_v2 = vsel %vm426_vm3, %v512_v37, 0.0 }
 0x13b   :  { %v482_v12 = vsub.f32 %v6138_v54, %v4857_v40  ;;  %v6139_v10 = vmax.f32 %v4798_v38, 0.0  ;;  %v499_v25 = vmul.f32 %v4956_v7, %v4956_v7  ;;  %v515_v41 = vmul.f32 %v497_v52, %v4765_v50 }
 0x13c   :  { %v531_v21 = vadd.f32 %v530_v44, %v529_v9  ;;  %v538_v18 = vsel %vm426_vm3, %v513_v45, 0.0  ;;  %v6140_v16 = vmax.f32 %v4812_v14, 0.0  ;;  %v516_v22 = vmul.f32 %v498_v58, %v4775_v8 }
 0x13d   :  { %v483_v42 = vsub.f32 %v6139_v10, %v4857_v40  ;;  %v500_v32 = vmul.f32 %v482_v12, %v482_v12  ;;  %v540_v43 = vsel %vm426_vm3, %v514_v62, 0.0  ;;  %v6141_v38 = vmax.f32 %v4828_v47, 0.0 }
 0x13e   :  { %v533_v13 = vadd.f32 %v532_v1, %v531_v21  ;;  %v484_v11 = vsub.f32 %v6140_v16, %v4857_v40  ;;  %v517_v50 = vmul.f32 %v499_v25, %v4790_v27  ;;  %v542_v48 = vsel %vm426_vm3, %v515_v41, 0.0 }
 0x13f   :  { %v4984_v29 = vsub.f32 %v6141_v38, %v4857_v40  ;;  %v501_v53 = vmul.f32 %v483_v42, %v483_v42  ;;  %v4991_v14 = vsub.f32 %v299_v28, %v4857_v40  ;;  %v518_v36 = vmul.f32 %v500_v32, %v4800_v39 }
 0x140   :  { %v535_v59 = vadd.f32 %v534_v15, %v533_v13  ;;  %v502_v8 = vmul.f32 %v484_v11, %v484_v11  ;;  %v544_v9 = vsel %vm426_vm3, %v516_v22, 0.0  ;;  %v546_v27 = vsel %vm426_vm3, %v517_v50, 0.0 }
 0x141   :  { %v503_v47 = vmul.f32 %v4984_v29, %v4984_v29  ;;  %v519_v30 = vmul.f32 %v501_v53, %v4814_v19  ;;  %v504_v21 = vmul.f32 %v4991_v14, %v4991_v14  ;;  %v548_v28 = vsel %vm426_vm3, %v518_v36, 0.0 }
 0x142   :  { %v537_v3 = vadd.f32 %v536_v2, %v535_v59  ;;  %v520_v31 = vmul.f32 %v502_v8, %v4821_v33  ;;  %v6144_v8 = vmov 0  }
 0x143   :  { %v521_v39 = vmul.f32 %v503_v47, %v4832_v4  ;;  %v550_v20 = vsel %vm426_vm3, %v519_v30, 0.0  ;;  %v522_v1 = vmul.f32 %v504_v21, %v4843_v61  ;;  %v5014_v61 = vld [vmem:[%s6142_s2] ss:$0 sm:$0xff] }
 0x144   :  { %v539_v46 = vadd.f32 %v538_v18, %v537_v3  ;;  %v552_v19 = vsel %vm426_vm3, %v520_v31, 0.0 }
 0x145   :  { %v554_v35 = vsel %vm426_vm3, %v521_v39, 0.0  ;;  %v556_v45 = vsel %vm426_vm3, %v522_v1, 0.0 }
 0x146   :  { %v541_v17 = vadd.f32 %v540_v43, %v539_v46  ;;  %v5023_v46 = vld [vmem:[%s6143_s29] ss:$0 sm:$0xff] }
 0x148   :  { %v543_v23 = vadd.f32 %v542_v48, %v541_v17 }
 0x14a   :  { %v545_v56 = vadd.f32 %v544_v9, %v543_v23 }
 0x14c   :  { %v547_v44 = vadd.f32 %v546_v27, %v545_v56 }
 0x14e   :  { %v549_v40 = vadd.f32 %v548_v28, %v547_v44 }
 0x150   :  { %v551_v37 = vadd.f32 %v550_v20, %v549_v40 }
 0x152   :  { %v553_v13 = vadd.f32 %v552_v19, %v551_v37 }
 0x154   :  { %v555_v52 = vadd.f32 %v554_v35, %v553_v13 }
 0x156   :  { %v557_v15 = vadd.f32 %v556_v45, %v555_v52 }
 0x158   :  { %v558_v33 = vrot.slane %v557_v15, 4 }
 0x15a   :  { %v559_v59 = vadd.f32 %v558_v33, %v557_v15 }
 0x15c   :  { %v560_v54 = vrot.slane %v559_v59, 2 }
 0x15e   :  { %v561_v58 = vadd.f32 %v560_v54, %v559_v59 }
 0x160   :  { %v562_v62 = vrot.slane %v561_v58, 1 }
 0x162   :  { %v563_v4 = vadd.f32 %v562_v62, %v561_v58 }
 0x164   :  { %v564_v2 = vmul.f32 0.007246377, %v563_v4 }
 0x166   :  { %v565_v3 = vadd.f32 1e-05, %v564_v2 }
 0x168   :  { %4423 = vrsqrt.f32 %v565_v3 }
 0x175   :  { %v5009_v10 = vpop.eup %4423 }
 0x176   :  { %v581_v25 = vmul.f32 %v5009_v10, %v483_v42  ;;  %v582_v41 = vmul.f32 %v5009_v10, %v484_v11  ;;  %v579_v18 = vmul.f32 %v5009_v10, %v4956_v7  ;;  %v580_v16 = vmul.f32 %v5009_v10, %v482_v12 }
 0x177   :  { %v577_v32 = vmul.f32 %v5009_v10, %v4938_v55  ;;  %v578_v11 = vmul.f32 %v5009_v10, %v4947_v60  ;;  %v575_v55 = vmul.f32 %v5009_v10, %v4920_v6  ;;  %v576_v53 = vmul.f32 %v5009_v10, %v4929_v49 }
 0x178   :  { %v606_v22 = vmul.f32 %v5014_v61, %v581_v25  ;;  %v607_v43 = vmul.f32 %v5014_v61, %v582_v41  ;;  %v604_v42 = vmul.f32 %v5014_v61, %v579_v18  ;;  %v605_v7 = vmul.f32 %v5014_v61, %v580_v16  ;;  %v4281_v18 = vld [vmem:[%s6136_s24 + $0x50] ss:$8 sps:$4 sm:$0xff]   ;;  %v4286_v16 = vld [vmem:[%s6136_s24 + $0x64] ss:$8 sps:$4 sm:$0xff]  }
 0x179   :  { %v602_v12 = vmul.f32 %v5014_v61, %v577_v32  ;;  %v603_v23 = vmul.f32 %v5014_v61, %v578_v11  ;;  %v600_v49 = vmul.f32 %v5014_v61, %v575_v55  ;;  %v601_v36 = vmul.f32 %v5014_v61, %v576_v53  ;;  %v4288_v32 = vld [vmem:[%s6136_s24 + $0x10] ss:$8 sps:$4 sm:$0xff]   ;;  %v4294_v11 = vld [vmem:[%s6136_s24 + $0x20] ss:$8 sps:$4 sm:$0xff]   ;;  %v4302_v53 = vld [vmem:[%s6136_s24 + $0x44] ss:$8 sps:$4 sm:$0xff]  }
 0x17a   :  { %v631_v17 = vadd.f32 %v5023_v46, %v606_v22  ;;  %v632_v38 = vadd.f32 %v5023_v46, %v607_v43  ;;  %v629_v48 = vadd.f32 %v5023_v46, %v604_v42  ;;  %v630_v60 = vadd.f32 %v5023_v46, %v605_v7  ;;  %v4289_v22 = vld [vmem:[%s6136_s24 + $0x60] ss:$8 sps:$4 sm:$0xff]   ;;  %v4290_v43 = vld [vmem:[%s6136_s24 + $0x24] ss:$8 sps:$4 sm:$0xff]   ;;  %v4292_v42 = vld [vmem:[%s6136_s24 + $0x74] ss:$8 sps:$4 sm:$0xff]  }
 0x17b   :  { %v627_v6 = vadd.f32 %v5023_v46, %v602_v12  ;;  %v628_v56 = vadd.f32 %v5023_v46, %v603_v23  ;;  %v573_v47 = vmul.f32 %v5009_v10, %v4902_v63  ;;  %v574_v30 = vmul.f32 %v5009_v10, %v4910_v5  ;;  %v4295_v7 = vld [vmem:[%s6136_s24 + $0x70] ss:$8 sps:$4 sm:$0xff]   ;;  %v4301_v55 = vld [vmem:[%s6136_s24 + $0x80] ss:$8 sps:$4 sm:$0xff]   ;;  %v4310_v23 = vld [vmem:[%s6136_s24 + $0xa4] ss:$8 sps:$4 sm:$0xff]  }
 0x17c   :  { %v5041_v50 = vpack.c.bf16 %v632_v38, %v631_v17  ;;  %v5053_v9 = vpack.c.bf16 %v630_v60, %v629_v48  ;;  %v625_v27 = vadd.f32 %v5023_v46, %v600_v49  ;;  %v626_v44 = vadd.f32 %v5023_v46, %v601_v36  ;;  %v4296_v17 = vld [vmem:[%s6136_s24 + $0x34] ss:$8 sps:$4 sm:$0xff]   ;;  %v4298_v38 = vld [vmem:[%s6136_s24 + $0x84] ss:$8 sps:$4 sm:$0xff]   ;;  %v4300_v12 = vld [vmem:[%s6136_s24 + $0x30] ss:$8 sps:$4 sm:$0xff]  }
 0x17d   :  { %v571_v21 = vmul.f32 %v5009_v10, %v4886_v51  ;;  %v5068_v31 = vpack.c.bf16 %v628_v56, %v627_v6  ;;  %v598_v63 = vmul.f32 %v5014_v61, %v573_v47  ;;  %v599_v5 = vmul.f32 %v5014_v61, %v574_v30  ;;  %v4306_v48 = vld [vmem:[%s6136_s24 + $0x40] ss:$8 sps:$4 sm:$0xff]   ;;  %v4307_v60 = vld [vmem:[%s6136_s24 + $0x90] ss:$8 sps:$4 sm:$0xff]   ;;  %v4311_v36 = vld [vmem:[%s6136_s24 + $0xb4] ss:$8 sps:$4 sm:$0xff]  }
 0x17e   :  { %716 = vmatpush1.bf16.msra.mxu1 %v5041_v50  ;;  %860 = vmatpush1.bf16.msra.mxu0 %v5041_v50  ;;  %v572_v28 = vmul.f32 %v5009_v10, %v4893_v57  ;;  %v5078_v40 = vpack.c.bf16 %v626_v44, %v625_v27  ;;  %v569_v39 = vmul.f32 %v5009_v10, %v4872_v24  ;;  %v6145_v6 = vmov 0.0   ;;  %v4308_v49 = vld [vmem:[%s6136_s24 + $0xa0] ss:$8 sps:$4 sm:$0xff]   ;;  %v4314_v56 = vld [vmem:[%s6136_s24 + $0xc4] ss:$8 sps:$4 sm:$0xff]  }
 0x17f   :  { %717 = vmatprep.subr.bf16.mxu1 %v6144_v8  ;;  %861 = vmatprep.subr.bf16.mxu0 %v6144_v8  ;;  %v596_v51 = vmul.f32 %v5014_v61, %v571_v21  ;;  %v623_v20 = vadd.f32 %v5023_v46, %v598_v63  ;;  %v624_v37 = vadd.f32 %v5023_v46, %v599_v5  ;;  %v4316_v47 = vld [vmem:[%s6136_s24 + $0xc0] ss:$8 sps:$4 sm:$0xff]   ;;  %v4317_v30 = vld [vmem:[%s6136_s24 + $0xd4] ss:$8 sps:$4 sm:$0xff]   ;;  %v4319_v27 = vld [vmem:[%s6136_s24 + $0xd0] ss:$8 sps:$4 sm:$0xff]  }
 0x180   :  { %v597_v57 = vmul.f32 %v5014_v61, %v572_v28  ;;  %v570_v1 = vmul.f32 %v5009_v10, %v4877_v34  ;;  %v594_v24 = vmul.f32 %v5014_v61, %v569_v39  ;;  %v567_v13 = vmul.f32 %v5009_v10, %v4862_v0  ;;  %v4320_v44 = vld [vmem:[%s6136_s24 + $0xe4] ss:$8 sps:$4 sm:$0xff]   ;;  %v4322_v21 = vld [vmem:[%s6136_s24 + $0xe0] ss:$8 sps:$4 sm:$0xff]   ;;  %v4324_v63 = vld [vmem:[%s6097_s7 + $0x38] sm:$0xff]  }
 0x181   :  { %v621_v19 = vadd.f32 %v5023_v46, %v596_v51  ;;  %v5096_v35 = vpack.c.bf16 %v624_v37, %v623_v20  ;;  %v568_v45 = vmul.f32 %v5009_v10, %v4867_v26  ;;  %v584_v15 = vmul.f32 %v5009_v10, %v4991_v14  ;;  %v4325_v5 = vld [vmem:[%s6097_s7 + $0x70] sm:$0xff]   ;;  %v4326_v28 = vld [vmem:[%s6097_s7 + $0xb8] sm:$0xff]   ;;  %v4328_v51 = vld [vmem:[%s6097_s7 + $0x68] sm:$0xff]  }
 0x182   :  { %718 = vmatpush1.bf16.msra.mxu1 %v5053_v9  ;;  %862 = vmatpush1.bf16.msra.mxu0 %v5053_v9  ;;  %v622_v52 = vadd.f32 %v5023_v46, %v597_v57  ;;  %v595_v34 = vmul.f32 %v5014_v61, %v570_v1  ;;  %v619_v0 = vadd.f32 %v5023_v46, %v594_v24  ;;  %v4329_v39 = vld [vmem:[%s6097_s7 + $0xb0] sm:$0xff]   ;;  %v4330_v20 = vld [vmem:[%s6097_s7 + $0x28] sm:$0xff]   ;;  %v4331_v37 = vld [vmem:[%s6097_s7 + $0x60] sm:$0xff]  }
 0x183   :  { %719 = vmatprep.subr.bf16.mxu1 %v6144_v8  ;;  %863 = vmatprep.subr.bf16.mxu0 %v6144_v8  ;;  %v592_v33 = vmul.f32 %v5014_v61, %v567_v13  ;;  %v593_v26 = vmul.f32 %v5014_v61, %v568_v45  ;;  %v583_v58 = vmul.f32 %v5009_v10, %v4984_v29  ;;  %v4332_v57 = vld [vmem:[%s6097_s7 + $0xa8] sm:$0xff]   ;;  %v4333_v1 = vld [vmem:[%s6097_s7 + $0x20] sm:$0xff]  }
 0x184   :  { %v5110_v59 = vpack.c.bf16 %v622_v52, %v621_v19  ;;  %v620_v54 = vadd.f32 %v5023_v46, %v595_v34  ;;  %v609_v14 = vmul.f32 %v5014_v61, %v584_v15  ;;  %v4334_v19 = vld [vmem:[%s6097_s7 + $0x58] sm:$0xff]   ;;  %v4335_v24 = vld [vmem:[%s6097_s7 + $0xa0] sm:$0xff]   ;;  %v4337_v34 = vld [vmem:[%s6097_s7 + $0x50] sm:$0xff]  }
 0x185   :  { %v617_v4 = vadd.f32 %v5023_v46, %v592_v33  ;;  %v618_v2 = vadd.f32 %v5023_v46, %v593_v26  ;;  %v608_v3 = vmul.f32 %v5014_v61, %v583_v58  ;;  %v4278_v61 = vld [vmem:[%s6136_s24] ss:$8 sps:$4 sm:$0xff]   ;;  %v4336_v52 = vld [vmem:[%s6097_s7 + $0x18] sm:$0xff]   ;;  %v4339_v33 = vld [vmem:[%s6097_s7 + $0x10] sm:$0xff]  }
 0x186   :  { %720 = vmatpush1.bf16.msra.mxu1 %v5068_v31  ;;  %864 = vmatpush1.bf16.msra.mxu0 %v5068_v31  ;;  %v636_v62 = vpack.c.bf16 %v620_v54, %v619_v0  ;;  %v634_v25 = vadd.f32 %v5023_v46, %v609_v14  ;;  %v4338_v0 = vld [vmem:[%s6097_s7 + $0x98] sm:$0xff]   ;;  %v4340_v26 = vld [vmem:[%s6097_s7 + $0x48] sm:$0xff]   ;;  %v4341_v58 = vld [vmem:[%s6097_s7 + $0x90] sm:$0xff]  }
 0x187   :  { %721 = vmatprep.subr.bf16.mxu1 %v6144_v8  ;;  %865 = vmatprep.subr.bf16.mxu0 %v6144_v8  ;;  %v635_v29 = vpack.c.bf16 %v618_v2, %v617_v4  ;;  %v633_v10 = vadd.f32 %v5023_v46, %v608_v3  ;;  %v4284_v46 = vld [vmem:[%s6136_s24 + $0x14] ss:$8 sps:$4 sm:$0xff]   ;;  %v4342_v3 = vld [vmem:[%s6097_s7 + $0x8] sm:$0xff]  }
 0x189   :  { %v643_v41 = vpack.c.bf16 %v634_v25, %v633_v10 }
 0x18a   :  { %722 = vmatpush1.bf16.msra.mxu1 %v5078_v40  ;;  %866 = vmatpush1.bf16.msra.mxu0 %v5078_v40 }
 0x18b   :  { %723 = vmatprep.subr.bf16.mxu1 %v6144_v8  ;;  %867 = vmatprep.subr.bf16.mxu0 %v6144_v8 }
 0x18e   :  { %724 = vmatpush1.bf16.msra.mxu1 %v5096_v35  ;;  %868 = vmatpush1.bf16.msra.mxu0 %v5096_v35 }
 0x18f   :  { %725 = vmatprep.subr.bf16.mxu1 %v6144_v8  ;;  %869 = vmatprep.subr.bf16.mxu0 %v6144_v8 }
 0x192   :  { %726 = vmatpush1.bf16.msra.mxu1 %v5110_v59  ;;  %870 = vmatpush1.bf16.msra.mxu0 %v5110_v59 }
 0x193   :  { %727 = vmatprep.subr.bf16.mxu1 %v6144_v8  ;;  %871 = vmatprep.subr.bf16.mxu0 %v6144_v8 }
 0x196   :  { %728 = vmatpush1.bf16.msra.mxu1 %v636_v62  ;;  %872 = vmatpush1.bf16.msra.mxu0 %v636_v62 }
 0x197   :  { %729 = vmatprep.subr.bf16.mxu1 %v6144_v8  ;;  %873 = vmatprep.subr.bf16.mxu0 %v6144_v8 }
 0x19a   :  { %730 = vmatpush1.bf16.msra.mxu1 %v635_v29  ;;  %874 = vmatpush1.bf16.msra.mxu0 %v635_v29 }
 0x19b   :  { %745 = vmatprep.subr.bf16.mxu1 %v6144_v8  ;;  %889 = vmatprep.subr.bf16.mxu0 %v6144_v8 }
 0x19e   :  { %746 = vmatpush2.bf16.msra.mxu1 %v643_v41  ;;  %890 = vmatpush2.bf16.msra.mxu0 %v643_v41 }
 0x19f   :  { %1013 = vmatprep.subr.bf16.mxu1 %v6144_v8 }
 0x1a1   :  { %748 = vmatmul.mubr.bf16.vlgmr.msra.gmra.mxu1 %v4278_v61  ;;  %892 = vmatmul.mubr.bf16.vlgmr.msra.gmra.mxu0 %v4281_v18 }
 0x1a2   :  { %1014 = vmatpush1.bf16.msra.mxu1 %v5041_v50  ;;  %3646 = vmatprep.mubr.msk.bf16.mxu1 %vm699_vm4, %v4284_v46  ;;  %v4304_v50 = vld [vmem:[%s6136_s24 + $0x94] ss:$8 sps:$4 sm:$0xff]  }
 0x1a3   :  { %1015 = vmatprep.subr.bf16.mxu1 %v6144_v8  ;;  %3671 = vmatprep.mubr.msk.bf16.mxu0 %vm699_vm4, %v4286_v16 }
 0x1a6   :  { %1016 = vmatpush1.bf16.msra.mxu1 %v5053_v9  ;;  %v4313_v9 = vld [vmem:[%s6136_s24 + $0xb0] ss:$8 sps:$4 sm:$0xff]  }
 0x1a7   :  { %1017 = vmatprep.subr.bf16.mxu1 %v6144_v8 }
 0x1a9   :  { %756 = vmatmul.mubr.bf16.gmra.mxu1 %v4288_v32  ;;  %900 = vmatmul.mubr.bf16.gmra.mxu0 %v4289_v22 }
 0x1aa   :  { %1018 = vmatpush1.bf16.msra.mxu1 %v5068_v31  ;;  %3647 = vmatprep.mubr.msk.bf16.mxu1 %vm699_vm4, %v4290_v43  ;;  %v4323_v31 = vld [vmem:[%s6097_s7 + $0x78] sm:$0xff]  }
 0x1ab   :  { %1019 = vmatprep.subr.bf16.mxu1 %v6144_v8  ;;  %3672 = vmatprep.mubr.msk.bf16.mxu0 %vm699_vm4, %v4292_v42 }
 0x1ac   :  { %3876 = vmatprep.subr.bf16.mxu0 %v4323_v31 }
 0x1ad   :  { %3877 = vmatpush3.bf16.msra.mxu0 %v4324_v63 }
 0x1ae   :  { %1020 = vmatpush1.bf16.msra.mxu1 %v5078_v40  ;;  %3878 = vmatprep.subr.bf16.mxu0 %v4325_v5  ;;  %v4327_v40 = vld [vmem:[%s6097_s7 + $0x30] sm:$0xff]  }
 0x1af   :  { %1021 = vmatprep.subr.bf16.mxu1 %v6144_v8 }
 0x1b1   :  { %764 = vmatmul.mubr.bf16.gmra.mxu1 %v4294_v11  ;;  %908 = vmatmul.mubr.bf16.gmra.mxu0 %v4295_v7 }
 0x1b2   :  { %1022 = vmatpush1.bf16.msra.mxu1 %v5096_v35  ;;  %3648 = vmatprep.mubr.msk.bf16.mxu1 %vm699_vm4, %v4296_v17 }
 0x1b3   :  { %1023 = vmatprep.subr.bf16.mxu1 %v6144_v8  ;;  %3673 = vmatprep.mubr.msk.bf16.mxu0 %vm699_vm4, %v4298_v38 }
 0x1b4   :  { %3879 = vmatpush3.bf16.msra.mxu0 %v4327_v40 }
 0x1b5   :  { %3880 = vmatprep.subr.bf16.mxu0 %v4328_v51 }
 0x1b6   :  { %1024 = vmatpush1.bf16.msra.mxu1 %v5110_v59 }
 0x1b7   :  { %1025 = vmatprep.subr.bf16.mxu1 %v6144_v8 }
 0x1b8   :  { %3881 = vmatpush3.bf16.msra.mxu0 %v4330_v20 }
 0x1b9   :  { %772 = vmatmul.mubr.bf16.gmra.mxu1 %v4300_v12  ;;  %916 = vmatmul.mubr.bf16.gmra.mxu0 %v4301_v55 }
 0x1ba   :  { %1026 = vmatpush1.bf16.msra.mxu1 %v636_v62  ;;  %3649 = vmatprep.mubr.msk.bf16.mxu1 %vm699_vm4, %v4302_v53 }
 0x1bb   :  { %1027 = vmatprep.subr.bf16.mxu1 %v6144_v8  ;;  %3674 = vmatprep.mubr.msk.bf16.mxu0 %vm699_vm4, %v4304_v50 }
 0x1bc   :  { %3882 = vmatprep.subr.bf16.mxu0 %v4331_v37 }
 0x1bd   :  { %3883 = vmatpush3.bf16.msra.mxu0 %v4333_v1 }
 0x1be   :  { %1028 = vmatpush1.bf16.msra.mxu1 %v635_v29  ;;  %3884 = vmatprep.subr.bf16.mxu0 %v4334_v19  ;;  %v4343_v19 = vld [vmem:[%s6097_s7 + $0x40] sm:$0xff]  }
 0x1bf   :  { %1043 = vmatprep.subr.bf16.mxu1 %v6144_v8 }
 0x1c1   :  { %780 = vmatmul.mubr.bf16.gmra.mxu1 %v4306_v48  ;;  %924 = vmatmul.mubr.bf16.gmra.mxu0 %v4307_v60 }
 0x1c2   :  { %1044 = vmatpush2.bf16.msra.mxu1 %v643_v41  ;;  %3695 = vmatprep.mubr.msk.bf16.mxu1 %vm699_vm4, %v4310_v23 }
 0x1c3   :  { %4090 = vmatprep.subr.bf16.mxu1 %v6145_v6  ;;  %3885 = vmatpush3.bf16.msra.mxu0 %v4336_v52 }
 0x1c4   :  { %3886 = vmatprep.subr.bf16.mxu0 %v4337_v34 }
 0x1c7   :  { %3887 = vmatpush3.bf16.msra.mxu0 %v4339_v33 }
 0x1c8   :  { %3888 = vmatprep.subr.bf16.mxu0 %v4340_v26 }
 0x1c9   :  { %1046 = vmatmul.mubr.bf16.vlgmr.msra.gmra.mxu1 %v4308_v49 }
 0x1ca   :  { %3696 = vmatprep.mubr.msk.bf16.mxu1 %vm699_vm4, %v4311_v36  ;;  %4091 = vmatpush3.bf16.msra.mxu1 %v4326_v28 }
 0x1cb   :  { %4092 = vmatprep.subr.bf16.mxu1 %v6145_v6  ;;  %3889 = vmatpush3.bf16.msra.mxu0 %v4342_v3 }
 0x1cc   :  { %3890 = vmatprep.subr.bf16.mxu0 %v4343_v19 }
 0x1ce   :  { %4093 = vmatpush3.bf16.msra.mxu1 %v4329_v39 }
 0x1cf   :  { %4094 = vmatprep.subr.bf16.mxu1 %v6145_v6 }
 0x1d1   :  { %1054 = vmatmul.mubr.bf16.gmra.mxu1 %v4313_v9 }
 0x1d2   :  { %3697 = vmatprep.mubr.msk.bf16.mxu1 %vm699_vm4, %v4314_v56  ;;  %4095 = vmatpush3.bf16.msra.mxu1 %v4332_v57 }
 0x1d3   :  { %4096 = vmatprep.subr.bf16.mxu1 %v6145_v6 }
 0x1d6   :  { %4097 = vmatpush3.bf16.msra.mxu1 %v4335_v24  ;;  %v4344_v24 = vld [vmem:[%s6097_s7 + $0x88] sm:$0xff]  }
 0x1d7   :  { %4098 = vmatprep.subr.bf16.mxu1 %v6145_v6 }
 0x1d9   :  { %1062 = vmatmul.mubr.bf16.gmra.mxu1 %v4316_v47 }
 0x1da   :  { %3698 = vmatprep.mubr.msk.bf16.mxu1 %vm699_vm4, %v4317_v30  ;;  %4099 = vmatpush3.bf16.msra.mxu1 %v4338_v0  ;;  %v4346_v0 = vld [vmem:[%s6097_s7 + $0x80] sm:$0xff]  }
 0x1db   :  { %4100 = vmatprep.subr.bf16.mxu1 %v6145_v6 }
 0x1de   :  { %4101 = vmatpush3.bf16.msra.mxu1 %v4341_v58 }
 0x1df   :  { %4102 = vmatprep.subr.bf16.mxu1 %v6145_v6 }
 0x1e1   :  { %1070 = vmatmul.mubr.bf16.gmra.mxu1 %v4319_v27 }
 0x1e2   :  { %3699 = vmatprep.mubr.msk.bf16.mxu1 %vm699_vm4, %v4320_v44  ;;  %4103 = vmatpush3.bf16.msra.mxu1 %v4344_v24 }
 0x1e3   :  { %4104 = vmatprep.subr.bf16.mxu1 %v6145_v6 }
 0x1e6   :  { %4105 = vmatpush3.bf16.msra.mxu1 %v4346_v0 }
 0x1e9   :  { %1078 = vmatmul.mubr.bf16.gmra.mxu1 %v4322_v21 }
 0x1ea   :  { %4106 = vmatprep.mubr.msk.bf16.mxu1 %vm4428_vm1, %v6145_v6 }
 0x261   :  { %v5286_v13 = vpop.f32.mrf.mxu1  ;;  %v5288_v35 = vpop.f32.mrf.mxu0 }
 0x262   :  { %v932_v44 = vmax.f32 %v5286_v13, %v5288_v35  ;;  %v4345_v13 = vld [vmem:[%s6097_s7] sm:$0xff]  }
 0x263   :  { %v751_v45 = vpop.f32.mrf.mxu1  ;;  %v895_v15 = vpop.f32.mrf.mxu0  ;;  %3891 = vmatpush3.bf16.msra.mxu0 %v4345_v13 }
 0x265   :  { %v752_v59 = vpop.f32.mrf.mxu1  ;;  %v896_v54 = vpop.f32.mrf.mxu0 }
 0x266   :  { %v933_v5 = vmax.f32 %v752_v59, %v896_v54 }
 0x267   :  { %v754_v14 = vpop.f32.mrf.mxu1  ;;  %v898_v62 = vpop.f32.mrf.mxu0 }
 0x269   :  { %v757_v4 = vpop.f32.mrf.mxu1  ;;  %v901_v2 = vpop.f32.mrf.mxu0 }
 0x26a   :  { %v934_v39 = vmax.f32 %v757_v4, %v901_v2 }
 0x26b   :  { %v759_v29 = vpop.f32.mrf.mxu1  ;;  %v903_v10 = vpop.f32.mrf.mxu0 }
 0x26d   :  { %v760_v25 = vpop.f32.mrf.mxu1  ;;  %v904_v41 = vpop.f32.mrf.mxu0 }
 0x26e   :  { %v935_v1 = vmax.f32 %v760_v25, %v904_v41 }
 0x26f   :  { %v762_v61 = vpop.f32.mrf.mxu1  ;;  %v906_v18 = vpop.f32.mrf.mxu0 }
 0x271   :  { %v765_v46 = vpop.f32.mrf.mxu1  ;;  %v909_v16 = vpop.f32.mrf.mxu0 }
 0x272   :  { %v936_v45 = vmax.f32 %v765_v46, %v909_v16 }
 0x273   :  { %v767_v32 = vpop.f32.mrf.mxu1  ;;  %v911_v22 = vpop.f32.mrf.mxu0 }
 0x275   :  { %v5315_v43 = vpop.f32.mrf.mxu1  ;;  %v5317_v42 = vpop.f32.mrf.mxu0 }
 0x276   :  { %v937_v62 = vmax.f32 %v5315_v43, %v5317_v42 }
 0x277   :  { %v770_v11 = vpop.f32.mrf.mxu1  ;;  %v914_v7 = vpop.f32.mrf.mxu0 }
 0x279   :  { %v5319_v17 = vpop.f32.mrf.mxu1  ;;  %v5321_v38 = vpop.f32.mrf.mxu0 }
 0x27a   :  { %v938_v61 = vmax.f32 %v5319_v17, %v5321_v38 }
 0x27b   :  { %v775_v12 = vpop.f32.mrf.mxu1  ;;  %v919_v55 = vpop.f32.mrf.mxu0 }
 0x27d   :  { %v5323_v53 = vpop.f32.mrf.mxu1  ;;  %v5325_v50 = vpop.f32.mrf.mxu0 }
 0x27e   :  { %v939_v7 = vmax.f32 %v5323_v53, %v5325_v50 }
 0x27f   :  { %v778_v48 = vpop.f32.mrf.mxu1  ;;  %v922_v60 = vpop.f32.mrf.mxu0 }
 0x281   :  { %v5327_v23 = vpop.f32.mrf.mxu1  ;;  %v5329_v49 = vpop.f32.mrf.mxu0 }
 0x283   :  { %v783_v36 = vpop.f32.mrf.mxu1  ;;  %v927_v9 = vpop.f32.mrf.mxu0 }
 0x284   :  { %v940_v9 = vmax.f32 %v5327_v23, %v5329_v49 }
 0x285   :  { %v5331_v56 = vpop.f32.mrf.mxu1  ;;  %v5333_v47 = vpop.f32.mrf.mxu0 }
 0x287   :  { %v786_v30 = vpop.f32.mrf.mxu1  ;;  %v930_v27 = vpop.f32.mrf.mxu0 }
 0x289   :  { %v1047_v21 = vpop.f32.mrf.mxu1 }
 0x28a   :  { %v1086_v31 = vmax.f32 %v932_v44, %v1047_v21 }
 0x28b   :  { %v1049_v63 = vpop.f32.mrf.mxu1 }
 0x28c   :  { %1096 = vst.msk [vmem:[#allocation2] sm:$0xff] %vm426_vm3, %v1086_v31 }
 0x28d   :  { %v1050_v28 = vpop.f32.mrf.mxu1 }
 0x28e   :  { %v1087_v40 = vmax.f32 %v933_v5, %v1050_v28  ;;  %v941_v5 = vmax.f32 %v5331_v56, %v5333_v47 }
 0x28f   :  { %v1052_v51 = vpop.f32.mrf.mxu1 }
 0x290   :  { %1097 = vst.msk [vmem:[#allocation2 + $0x8] sm:$0xff] %vm426_vm3, %v1087_v40 }
 0x291   :  { %v1055_v20 = vpop.f32.mrf.mxu1 }
 0x292   :  { %v1088_v37 = vmax.f32 %v934_v39, %v1055_v20 }
 0x293   :  { %v1057_v57 = vpop.f32.mrf.mxu1 }
 0x294   :  { %1098 = vst.msk [vmem:[#allocation2 + $0x10] sm:$0xff] %vm426_vm3, %v1088_v37 }
 0x295   :  { %v1058_v35 = vpop.f32.mrf.mxu1 }
 0x296   :  { %v1089_v52 = vmax.f32 %v935_v1, %v1058_v35 }
 0x297   :  { %v1060_v34 = vpop.f32.mrf.mxu1  ;;  %v1137_v59 = vld [vmem:[#allocation2 + $0x3] sm:$0xff] }
 0x298   :  { %1099 = vst.msk [vmem:[#allocation2 + $0x18] sm:$0xff] %vm426_vm3, %v1089_v52  ;;  %v1117_v58 = vld [vmem:[#allocation2 + $0x1] sm:$0xff] }
 0x299   :  { %v1063_v15 = vpop.f32.mrf.mxu1  ;;  %v1157_v41 = vld [vmem:[#allocation2 + $0x5] sm:$0xff] }
 0x29a   :  { %v1090_v33 = vmax.f32 %v936_v45, %v1063_v15 }
 0x29b   :  { %v1065_v54 = vpop.f32.mrf.mxu1  ;;  %v1138_v26 = vld [vmem:[#allocation2 + $0xb] sm:$0xff] }
 0x29c   :  { %v1118_v14 = vld [vmem:[#allocation2 + $0x9] sm:$0xff]  ;;  %1100 = vst.msk [vmem:[#allocation2 + $0x20] sm:$0xff] %vm426_vm3, %v1090_v33  ;;  %v4194_v4 = vpack.i.bf16 %v1138_v26, %v1137_v59 }
 0x29d   :  { %v4199_v2 = vpack.i.bf16 %v1118_v14, %v1117_v58  ;;  %v1066_v3 = vpop.f32.mrf.mxu1  ;;  %v1158_v29 = vld [vmem:[#allocation2 + $0xd] sm:$0xff] }
 0x29e   :  { %v1091_v10 = vmax.f32 %v937_v62, %v1066_v3  ;;  %4195 = vrot.lane.b32.xlu0 %v4194_v4, %s4430_s23  ;;  %v4204_v18 = vpack.i.bf16 %v1158_v29, %v1157_v41  ;;  %v1688_v14 = vld [vmem:[%s6098_s11 + $0x8] sm:$0xff]  ;;  %v1687_v62 = vld [vmem:[%s6098_s11] sm:$0xff]  ;;  %v1690_v4 = vld [vmem:[%s6098_s11 + $0x18] sm:$0xff] }
 0x29f   :  { %4200 = vrot.lane.b32.xlu1 %v4199_v2, %s4430_s23  ;;  %v1068_v25 = vpop.f32.mrf.mxu1  ;;  %v1139_v32 = vld [vmem:[#allocation2 + $0x13] sm:$0xff]  ;;  %v1692_v3 = vld [vmem:[%s6098_s11 + $0x28] sm:$0xff]  ;;  %v1691_v29 = vld [vmem:[%s6098_s11 + $0x20] sm:$0xff] }
 0x2a0   :  { %1101 = vst.msk [vmem:[#allocation2 + $0x28] sm:$0xff] %vm426_vm3, %v1091_v10  ;;  %v1119_v42 = vld [vmem:[#allocation2 + $0x11] sm:$0xff]  ;;  %v1696_v41 = vld [vmem:[%s6098_s11 + $0x48] sm:$0xff] }
 0x2a1   :  { %v1071_v46 = vpop.f32.mrf.mxu1  ;;  %v1159_v36 = vld [vmem:[#allocation2 + $0x15] sm:$0xff] }
 0x2a2   :  { %v1092_v16 = vmax.f32 %v938_v61, %v1071_v46  ;;  %4205 = vrot.lane.b32.xlu0 %v4204_v18, %s4430_s23  ;;  %v1689_v2 = vld [vmem:[%s6098_s11 + $0x10] sm:$0xff]  ;;  %v1694_v10 = vld [vmem:[%s6098_s11 + $0x38] sm:$0xff]  ;;  %v1695_v61 = vld [vmem:[%s6098_s11 + $0x40] sm:$0xff] }
 0x2a3   :  { %v1073_v22 = vpop.f32.mrf.mxu1  ;;  %v1140_v43 = vld [vmem:[#allocation2 + $0x1b] sm:$0xff]  ;;  %v1693_v25 = vld [vmem:[%s6098_s11 + $0x30] sm:$0xff] }
 0x2a4   :  { %v1120_v11 = vld [vmem:[#allocation2 + $0x19] sm:$0xff]  ;;  %1102 = vst.msk [vmem:[#allocation2 + $0x30] sm:$0xff] %vm426_vm3, %v1092_v16  ;;  %v4209_v12 = vpack.i.bf16 %v1140_v43, %v1139_v32 }
 0x2a5   :  { %v4214_v55 = vpack.i.bf16 %v1120_v11, %v1119_v42  ;;  %v1074_v17 = vpop.f32.mrf.mxu1  ;;  %v1160_v38 = vld [vmem:[#allocation2 + $0x1d] sm:$0xff]  ;;  %v1108_v11 = vld [vmem:[#allocation2 + $0x8] sm:$0xff] }
 0x2a6   :  { %v1093_v48 = vmax.f32 %v939_v7, %v1074_v17  ;;  %4210 = vrot.lane.b32.xlu1 %v4209_v12, %s4430_s23  ;;  %v4219_v30 = vpack.i.bf16 %v1160_v38, %v1159_v36  ;;  %v1107_v22 = vld [vmem:[#allocation2] sm:$0xff]  ;;  %v1128_v12 = vld [vmem:[#allocation2 + $0xa] sm:$0xff] }
 0x2a7   :  { %4215 = vrot.lane.b32.xlu0 %v4214_v55, %s4430_s23  ;;  %v1076_v60 = vpop.f32.mrf.mxu1  ;;  %v1141_v27 = vld [vmem:[#allocation2 + $0x23] sm:$0xff] }
 0x2a8   :  { %1103 = vst.msk [vmem:[#allocation2 + $0x38] sm:$0xff] %vm426_vm3, %v1093_v48  ;;  %v1121_v31 = vld [vmem:[#allocation2 + $0x21] sm:$0xff] }
 0x2a9   :  { %v1079_v53 = vpop.f32.mrf.mxu1  ;;  %v1161_v20 = vld [vmem:[#allocation2 + $0x25] sm:$0xff] }
 0x2aa   :  { %v1094_v50 = vmax.f32 %v940_v9, %v1079_v53  ;;  %4220 = vrot.lane.b32.xlu1 %v4219_v30, %s4430_s23  ;;  %v1127_v7 = vld [vmem:[#allocation2 + $0x2] sm:$0xff] }
 0x2ab   :  { %v1081_v44 = vpop.f32.mrf.mxu1  ;;  %v1142_v21 = vld [vmem:[#allocation2 + $0x2b] sm:$0xff] }
 0x2ac   :  { %v1122_v63 = vld [vmem:[#allocation2 + $0x29] sm:$0xff]  ;;  %1104 = vst.msk [vmem:[#allocation2 + $0x40] sm:$0xff] %vm426_vm3, %v1094_v50  ;;  %v4224_v28 = vpack.i.bf16 %v1142_v21, %v1141_v27 }
 0x2ad   :  { %v4229_v40 = vpack.i.bf16 %v1122_v63, %v1121_v31  ;;  %v1082_v23 = vpop.f32.mrf.mxu1  ;;  %v1162_v49 = vld [vmem:[#allocation2 + $0x2d] sm:$0xff]  ;;  %v1147_v50 = vld [vmem:[#allocation2 + $0x4] sm:$0xff] }
 0x2ae   :  { %v1095_v51 = vmax.f32 %v941_v5, %v1082_v23  ;;  %4225 = vrot.lane.b32.xlu0 %v4224_v28, %s4430_s23  ;;  %v4234_v37 = vpack.i.bf16 %v1162_v49, %v1161_v20  ;;  %v1148_v27 = vld [vmem:[#allocation2 + $0xc] sm:$0xff]  ;;  %v1130_v20 = vld [vmem:[#allocation2 + $0x1a] sm:$0xff] }
 0x2af   :  { %4230 = vrot.lane.b32.xlu1 %v4229_v40, %s4430_s23  ;;  %v1084_v39 = vpop.f32.mrf.mxu1  ;;  %v1143_v57 = vld [vmem:[#allocation2 + $0x33] sm:$0xff] }
 0x2b0   :  { %1105 = vst.msk [vmem:[#allocation2 + $0x48] sm:$0xff] %vm426_vm3, %v1095_v51  ;;  %v1123_v47 = vld [vmem:[#allocation2 + $0x31] sm:$0xff] }
 0x2b1   :  { %v1163_v35 = vld [vmem:[#allocation2 + $0x35] sm:$0xff] }
 0x2b2   :  { %4235 = vrot.lane.b32.xlu0 %v4234_v37, %s4430_s23  ;;  %v1109_v51 = vld [vmem:[#allocation2 + $0x10] sm:$0xff]  ;;  %v1110_v37 = vld [vmem:[#allocation2 + $0x18] sm:$0xff] }
 0x2b3   :  { %v1144_v56 = vld [vmem:[#allocation2 + $0x3b] sm:$0xff]  ;;  %v1129_v39 = vld [vmem:[#allocation2 + $0x12] sm:$0xff] }
 0x2b4   :  { %v1124_v1 = vld [vmem:[#allocation2 + $0x39] sm:$0xff]  ;;  %v4239_v19 = vpack.i.bf16 %v1144_v56, %v1143_v57 }
 0x2b5   :  { %v4244_v24 = vpack.i.bf16 %v1124_v1, %v1123_v47  ;;  %v1164_v13 = vld [vmem:[#allocation2 + $0x3d] sm:$0xff] }
 0x2b6   :  { %4240 = vrot.lane.b32.xlu1 %v4239_v19, %s4430_s23  ;;  %v4249_v45 = vpack.i.bf16 %v1164_v13, %v1163_v35 }
 0x2b7   :  { %4245 = vrot.lane.b32.xlu0 %v4244_v24, %s4430_s23  ;;  %v1145_v52 = vld [vmem:[#allocation2 + $0x43] sm:$0xff]  ;;  %v1146_v34 = vld [vmem:[#allocation2 + $0x4b] sm:$0xff] }
 0x2b8   :  { %v4254_v15 = vpack.i.bf16 %v1146_v34, %v1145_v52  ;;  %v1165_v0 = vld [vmem:[#allocation2 + $0x45] sm:$0xff]  ;;  %v1166_v33 = vld [vmem:[#allocation2 + $0x4d] sm:$0xff] }
 0x2b9   :  { %v1125_v59 = vld [vmem:[#allocation2 + $0x41] sm:$0xff]  ;;  %v1126_v54 = vld [vmem:[#allocation2 + $0x49] sm:$0xff]  ;;  %v4264_v26 = vpack.i.bf16 %v1166_v33, %v1165_v0  ;;  %v1149_v34 = vld [vmem:[#allocation2 + $0x14] sm:$0xff] }
 0x2ba   :  { %4250 = vrot.lane.b32.xlu1 %v4249_v45, %s4430_s23  ;;  %v4259_v58 = vpack.i.bf16 %v1126_v54, %v1125_v59  ;;  %v1150_v45 = vld [vmem:[#allocation2 + $0x1c] sm:$0xff] }
 0x2bb   :  { %4255 = vrot.lane.b32.xlu0 %v4254_v15, %s4430_s23 }
 0x2be   :  { %4260 = vrot.lane.b32.xlu1 %v4259_v58, %s4430_s23 }
 0x2bf   :  { %4265 = vrot.lane.b32.xlu0 %v4264_v26, %s4430_s23 }
 0x2c2   :  { %1699 = vperm.xlu1 %4193, %v1687_v62  }
 0x2c3   :  { %1704 = vperm.xlu0 %4192, %v1688_v14  }
 0x2c6   :  { %1709 = vperm.xlu1 %4193, %v1689_v2   ;;  %v1131_v2 = vld [vmem:[#allocation2 + $0x22] sm:$0xff] }
 0x2c7   :  { %1714 = vperm.xlu0 %4192, %v1690_v4   ;;  %v1111_v4 = vld [vmem:[#allocation2 + $0x20] sm:$0xff] }
 0x2ca   :  { %1719 = vperm.xlu1 %4193, %v1691_v29   ;;  %v1112_v29 = vld [vmem:[#allocation2 + $0x28] sm:$0xff] }
 0x2cb   :  { %1724 = vperm.xlu0 %4192, %v1692_v3   ;;  %v1132_v3 = vld [vmem:[#allocation2 + $0x2a] sm:$0xff] }
 0x2ce   :  { %1729 = vperm.xlu1 %4193, %v1693_v25  }
 0x2cf   :  { %1734 = vperm.xlu0 %4192, %v1694_v10  }
 0x2d2   :  { %1739 = vperm.xlu1 %4193, %v1695_v61  }
 0x2d3   :  { %1744 = vperm.xlu0 %4192, %v1696_v41  }
 0x310   :  { %v4196_v18 = vpop.permute.xlu0 %4195 }
 0x311   :  { %v4201_v46 = vpop.permute.xlu1 %4200  ;;  %v4198_v16 = vunpack.i.h.bf16 %v4196_v18  ;;  %v4197_v32 = vunpack.i.l.bf16 %v4196_v18 }
 0x312   :  { %v4203_v43 = vunpack.i.h.bf16 %v4201_v46  ;;  %v4202_v42 = vunpack.i.l.bf16 %v4201_v46 }
 0x313   :  { %v1297_v38 = vsel %vm426_vm3, %v1127_v7, %v4197_v32  ;;  %v1298_v48 = vsel %vm426_vm3, %v1128_v12, %v4198_v16 }
 0x314   :  { %v1288_v55 = vsel %vm426_vm3, %v1108_v11, %v4203_v43  ;;  %v1287_v17 = vsel %vm426_vm3, %v1107_v22, %v4202_v42  ;;  %v4206_v36 = vpop.permute.xlu0 %4205  ;;  %v1318_v9 = vpack.c.bf16 %v1298_v48, %v1297_v38  ;;  %v1151_v43 = vld [vmem:[#allocation2 + $0x24] sm:$0xff]  ;;  %v1152_v42 = vld [vmem:[#allocation2 + $0x2c] sm:$0xff] }
 0x315   :  { %v1317_v60 = vpack.c.bf16 %v1288_v55, %v1287_v17  ;;  %v4208_v30 = vunpack.i.h.bf16 %v4206_v36  ;;  %v4207_v53 = vunpack.i.l.bf16 %v4206_v36 }
 0x316   :  { %1563 = vmatprep.mubr.bf16.mxu0 %v1318_v9  ;;  %v1113_v9 = vld [vmem:[#allocation2 + $0x30] sm:$0xff] }
 0x317   :  { %v1308_v44 = vsel %vm426_vm3, %v1148_v27, %v4208_v30  ;;  %v1307_v21 = vsel %vm426_vm3, %v1147_v50, %v4207_v53  ;;  %1564 = vmatmul.mubr.bf16.vlgmr.msra.gmra.mxu0 %v1317_v60  ;;  %v1133_v30 = vld [vmem:[#allocation2 + $0x32] sm:$0xff]  ;;  %v1134_v53 = vld [vmem:[#allocation2 + $0x3a] sm:$0xff] }
 0x318   :  { %v1319_v31 = vpack.c.bf16 %v1308_v44, %v1307_v21  ;;  %v4211_v63 = vpop.permute.xlu1 %4210  ;;  %v1114_v50 = vld [vmem:[#allocation2 + $0x38] sm:$0xff] }
 0x319   :  { %v4216_v5 = vpop.permute.xlu0 %4215  ;;  %v4213_v28 = vunpack.i.h.bf16 %v4211_v63  ;;  %v4212_v40 = vunpack.i.l.bf16 %v4211_v63 }
 0x31a   :  { %v4218_v23 = vunpack.i.h.bf16 %v4216_v5  ;;  %v4217_v49 = vunpack.i.l.bf16 %v4216_v5  ;;  %4107 = vmatmul.mubr.bf16.vlgmr.msra.gmra.mxu1 %v1319_v31 }
 0x31b   :  { %v1299_v57 = vsel %vm426_vm3, %v1129_v39, %v4212_v40  ;;  %v1300_v56 = vsel %vm426_vm3, %v1130_v20, %v4213_v28  ;;  %4110 = vmatprep.mubr.msk.bf16.mxu1 %vm4428_vm1, %v6145_v6  ;;  %v1153_v20 = vld [vmem:[#allocation2 + $0x34] sm:$0xff] }
 0x31c   :  { %v1289_v47 = vsel %vm426_vm3, %v1109_v51, %v4217_v49  ;;  %v1290_v1 = vsel %vm426_vm3, %v1110_v37, %v4218_v23  ;;  %v4221_v19 = vpop.permute.xlu1 %4220  ;;  %v1321_v24 = vpack.c.bf16 %v1300_v56, %v1299_v57  ;;  %v1135_v37 = vld [vmem:[#allocation2 + $0x42] sm:$0xff]  ;;  %v1136_v57 = vld [vmem:[#allocation2 + $0x4a] sm:$0xff] }
 0x31d   :  { %v1320_v13 = vpack.c.bf16 %v1290_v1, %v1289_v47  ;;  %v4223_v35 = vunpack.i.h.bf16 %v4221_v19  ;;  %v4222_v52 = vunpack.i.l.bf16 %v4221_v19  ;;  %v1154_v56 = vld [vmem:[#allocation2 + $0x3c] sm:$0xff] }
 0x31e   :  { %1571 = vmatprep.mubr.bf16.mxu0 %v1321_v24 }
 0x31f   :  { %1572 = vmatmul.mubr.bf16.gmra.mxu0 %v1320_v13  ;;  %v1309_v15 = vsel %vm426_vm3, %v1149_v34, %v4222_v52  ;;  %v1310_v0 = vsel %vm426_vm3, %v1150_v45, %v4223_v35 }
 0x320   :  { %v4226_v33 = vpop.permute.xlu0 %4225  ;;  %v1322_v54 = vpack.c.bf16 %v1310_v0, %v1309_v15 }
 0x321   :  { %v4231_v59 = vpop.permute.xlu1 %4230  ;;  %v4228_v26 = vunpack.i.h.bf16 %v4226_v33  ;;  %v4227_v58 = vunpack.i.l.bf16 %v4226_v33 }
 0x322   :  { %v4233_v14 = vunpack.i.h.bf16 %v4231_v59  ;;  %v4232_v62 = vunpack.i.l.bf16 %v4231_v59  ;;  %4111 = vmatmul.mubr.bf16.gmra.mxu1 %v1322_v54  ;;  %v1115_v59 = vld [vmem:[#allocation2 + $0x40] sm:$0xff]  ;;  %v1116_v54 = vld [vmem:[#allocation2 + $0x48] sm:$0xff] }
 0x323   :  { %v1301_v10 = vsel %vm426_vm3, %v1131_v2, %v4227_v58  ;;  %v1302_v25 = vsel %vm426_vm3, %v1132_v3, %v4228_v26  ;;  %4114 = vmatprep.mubr.msk.bf16.mxu1 %vm4428_vm1, %v6145_v6 }
 0x324   :  { %v1291_v41 = vsel %vm426_vm3, %v1111_v4, %v4232_v62  ;;  %v1292_v61 = vsel %vm426_vm3, %v1112_v29, %v4233_v14  ;;  %v4236_v18 = vpop.permute.xlu0 %4235  ;;  %v1324_v46 = vpack.c.bf16 %v1302_v25, %v1301_v10  ;;  %v1155_v62 = vld [vmem:[#allocation2 + $0x44] sm:$0xff]  ;;  %v1156_v4 = vld [vmem:[#allocation2 + $0x4c] sm:$0xff] }
 0x325   :  { %v1323_v16 = vpack.c.bf16 %v1292_v61, %v1291_v41  ;;  %v4238_v32 = vunpack.i.h.bf16 %v4236_v18  ;;  %v4237_v22 = vunpack.i.l.bf16 %v4236_v18 }
 0x326   :  { %1579 = vmatprep.mubr.bf16.mxu0 %v1324_v46 }
 0x327   :  { %1580 = vmatmul.mubr.bf16.gmra.mxu0 %v1323_v16  ;;  %v1311_v11 = vsel %vm426_vm3, %v1151_v43, %v4237_v22  ;;  %v1312_v7 = vsel %vm426_vm3, %v1152_v42, %v4238_v32 }
 0x328   :  { %v4241_v12 = vpop.permute.xlu1 %4240  ;;  %v1325_v17 = vpack.c.bf16 %v1312_v7, %v1311_v11 }
 0x329   :  { %v4246_v55 = vpop.permute.xlu0 %4245  ;;  %v4243_v38 = vunpack.i.h.bf16 %v4241_v12  ;;  %v4242_v48 = vunpack.i.l.bf16 %v4241_v12  ;;  %v5456_v12 = vld [vmem:[%s6099_s8] ss:$0 sm:$0xff] }
 0x32a   :  { %v4248_v60 = vunpack.i.h.bf16 %v4246_v55  ;;  %v4247_v36 = vunpack.i.l.bf16 %v4246_v55  ;;  %4115 = vmatmul.mubr.bf16.gmra.mxu1 %v1325_v17 }
 0x32b   :  { %v1303_v27 = vsel %vm426_vm3, %v1133_v30, %v4242_v48  ;;  %v1304_v44 = vsel %vm426_vm3, %v1134_v53, %v4243_v38  ;;  %4118 = vmatprep.mubr.msk.bf16.mxu1 %vm4428_vm1, %v6145_v6 }
 0x32c   :  { %v1293_v21 = vsel %vm426_vm3, %v1113_v9, %v4247_v36  ;;  %v1294_v31 = vsel %vm426_vm3, %v1114_v50, %v4248_v60  ;;  %v4251_v63 = vpop.permute.xlu1 %4250  ;;  %v1327_v28 = vpack.c.bf16 %v1304_v44, %v1303_v27 }
 0x32d   :  { %v4256_v5 = vpop.permute.xlu0 %4255  ;;  %v1326_v40 = vpack.c.bf16 %v1294_v31, %v1293_v21  ;;  %v4253_v23 = vunpack.i.h.bf16 %v4251_v63  ;;  %v4252_v49 = vunpack.i.l.bf16 %v4251_v63 }
 0x32e   :  { %v4258_v51 = vunpack.i.h.bf16 %v4256_v5  ;;  %v4257_v39 = vunpack.i.l.bf16 %v4256_v5  ;;  %1587 = vmatprep.mubr.bf16.mxu0 %v1327_v28 }
 0x32f   :  { %1588 = vmatmul.mubr.bf16.gmra.mxu0 %v1326_v40  ;;  %v1313_v19 = vsel %vm426_vm3, %v1153_v20, %v4252_v49  ;;  %v1314_v24 = vsel %vm426_vm3, %v1154_v56, %v4253_v23  ;;  %v4347_v56 = vld [vmem:[%s6100_s12] sm:$0xff]  }
 0x330   :  { %v1305_v47 = vsel %vm426_vm3, %v1135_v37, %v4257_v39  ;;  %v1306_v1 = vsel %vm426_vm3, %v1136_v57, %v4258_v51  ;;  %v4261_v35 = vpop.permute.xlu1 %4260  ;;  %v1328_v34 = vpack.c.bf16 %v1314_v24, %v1313_v19 }
 0x331   :  { %v4266_v13 = vpop.permute.xlu0 %4265  ;;  %v1330_v52 = vpack.c.bf16 %v1306_v1, %v1305_v47  ;;  %v4263_v0 = vunpack.i.h.bf16 %v4261_v35  ;;  %v4262_v33 = vunpack.i.l.bf16 %v4261_v35 }
 0x332   :  { %v4268_v45 = vunpack.i.h.bf16 %v4266_v13  ;;  %v4267_v15 = vunpack.i.l.bf16 %v4266_v13  ;;  %4119 = vmatmul.mubr.bf16.gmra.mxu1 %v1328_v34 }
 0x333   :  { %1595 = vmatprep.mubr.bf16.mxu0 %v1330_v52  ;;  %v1295_v26 = vsel %vm426_vm3, %v1115_v59, %v4262_v33  ;;  %v1296_v58 = vsel %vm426_vm3, %v1116_v54, %v4263_v0  ;;  %4122 = vmatprep.mubr.msk.bf16.mxu1 %vm4428_vm1, %v6145_v6 }
 0x334   :  { %v1329_v14 = vpack.c.bf16 %v1296_v58, %v1295_v26  ;;  %v1315_v2 = vsel %vm426_vm3, %v1155_v62, %v4267_v15  ;;  %v1316_v3 = vsel %vm426_vm3, %v1156_v4, %v4268_v45 }
 0x335   :  { %v1331_v29 = vpack.c.bf16 %v1316_v3, %v1315_v2 }
 0x337   :  { %1596 = vmatmul.mubr.bf16.gmra.mxu0 %v1329_v14 }
 0x338   :  { %4136 = vmatprep.mubr.msk.bf16.mxu0 %vm1904_vm5, %v4347_v56 }
 0x33a   :  { %4123 = vmatmul.mubr.bf16.gmra.mxu1 %v1331_v29 }
 0x33d   :  { %v5461_v44 = vpop.permute.xlu1 %1699 }
 0x33e   :  { %v5468_v23 = vpop.permute.xlu0 %1704 }
 0x341   :  { %v5480_v13 = vpop.permute.xlu1 %1709 }
 0x342   :  { %v5487_v0 = vpop.permute.xlu0 %1714 }
 0x3d7   :  { %v3892_v10 = vpop.f32.mrf.mxu0 }
 0x3d9   :  { %v3893_v25 = vpop.f32.mrf.mxu0 }
 0x3da   :  { %v1638_v41 = vpop.f32.mrf.mxu1  ;;  %v3894_v11 = vadd.f32 %v3893_v25, %v3892_v10  ;;  %v5503_v25 = vpop.permute.xlu1 %1719 }
 0x3db   :  { %v3895_v61 = vpop.f32.mrf.mxu0 }
 0x3dc   :  { %v4108_v18 = vpop.f32.mrf.mxu1  ;;  %v1566_v36 = vadd.f32 %v3894_v11, %v5456_v12 }
 0x3dd   :  { %v3896_v46 = vpop.f32.mrf.mxu0 }
 0x3de   :  { %v1641_v16 = vpop.f32.mrf.mxu1  ;;  %v3897_v43 = vadd.f32 %v3896_v46, %v3895_v61  ;;  %v5465_v63 = vadd.f32 %v1638_v41, %v1566_v36 }
 0x3df   :  { %v3898_v32 = vpop.f32.mrf.mxu0 }
 0x3e0   :  { %v4109_v22 = vpop.f32.mrf.mxu1  ;;  %v1569_v48 = vadd.f32 %v3897_v43, %v5456_v12  ;;  %v1677_v47 = vmax.f32 %v5465_v63, 0.0  ;;  %v5512_v43 = vpop.permute.xlu0 %1724 }
 0x3e1   :  { %v3899_v42 = vpop.f32.mrf.mxu0 }
 0x3e2   :  { %v1646_v7 = vpop.f32.mrf.mxu1  ;;  %v3900_v17 = vadd.f32 %v3899_v42, %v3898_v32  ;;  %v5463_v21 = vadd.f32 %v1641_v16, %v1569_v48  ;;  %v1747_v62 = vmul.f32 %v5461_v44, %v1677_v47 }
 0x3e3   :  { %v3901_v55 = vpop.f32.mrf.mxu0 }
 0x3e4   :  { %v4112_v38 = vpop.f32.mrf.mxu1  ;;  %v1574_v50 = vadd.f32 %v3900_v17, %v5456_v12  ;;  %v1678_v37 = vmax.f32 %v5463_v21, 0.0  ;;  %v1757_v42 = vsel %vm426_vm3, %v1747_v62, 0.0 }
 0x3e5   :  { %v3902_v60 = vpop.f32.mrf.mxu0 }
 0x3e6   :  { %v3903_v9 = vadd.f32 %v3902_v60, %v3901_v55  ;;  %v1649_v30 = vpop.f32.mrf.mxu1  ;;  %v5470_v51 = vadd.f32 %v1646_v7, %v1574_v50  ;;  %v1748_v33 = vmul.f32 %v5468_v23, %v1678_v37  ;;  %v4349_v7 = vld [vmem:[%s6100_s12 + $0x10] sm:$0xff]  }
 0x3e7   :  { %v3904_v53 = vpop.f32.mrf.mxu0  ;;  %4150 = vmatprep.mubr.msk.bf16.mxu1 %vm1904_vm5, %v4349_v7 }
 0x3e8   :  { %v4113_v27 = vpop.f32.mrf.mxu1  ;;  %v1577_v5 = vadd.f32 %v3903_v9, %v5456_v12  ;;  %v1679_v52 = vmax.f32 %v5470_v51, 0.0  ;;  %v1758_v41 = vsel %vm426_vm3, %v1748_v33, 0.0 }
 0x3e9   :  { %v3905_v31 = vpop.f32.mrf.mxu0  ;;  %v1759_v36 = vadd.f32 %v1758_v41, %v1757_v42 }
 0x3ea   :  { %v3906_v28 = vadd.f32 %v3905_v31, %v3904_v53  ;;  %v1654_v40 = vpop.f32.mrf.mxu1  ;;  %v5478_v1 = vadd.f32 %v1649_v30, %v1577_v5  ;;  %v1749_v2 = vmul.f32 %v5480_v13, %v1679_v52  ;;  %v5529_v5 = vpop.permute.xlu1 %1729 }
 0x3eb   :  { %v3907_v49 = vpop.f32.mrf.mxu0 }
 0x3ec   :  { %v1582_v39 = vadd.f32 %v3906_v28, %v5456_v12  ;;  %v4116_v20 = vpop.f32.mrf.mxu1  ;;  %v1680_v54 = vmax.f32 %v5478_v1, 0.0  ;;  %v1760_v55 = vsel %vm426_vm3, %v1749_v2, 0.0 }
 0x3ed   :  { %v3908_v57 = vpop.f32.mrf.mxu0  ;;  %v1761_v28 = vadd.f32 %v1760_v55, %v1759_v36 }
 0x3ee   :  { %v3909_v19 = vadd.f32 %v3908_v57, %v3907_v49  ;;  %v1657_v24 = vpop.f32.mrf.mxu1  ;;  %v5484_v34 = vadd.f32 %v1654_v40, %v1582_v39  ;;  %v1750_v18 = vmul.f32 %v5487_v0, %v1680_v54 }
 0x3ef   :  { %v3910_v35 = vpop.f32.mrf.mxu0 }
 0x3f0   :  { %v1585_v45 = vadd.f32 %v3909_v19, %v5456_v12  ;;  %v4117_v15 = vpop.f32.mrf.mxu1  ;;  %v1681_v3 = vmax.f32 %v5484_v34, 0.0  ;;  %v1762_v30 = vsel %vm426_vm3, %v1750_v18, 0.0  ;;  %v5536_v19 = vpop.permute.xlu0 %1734 }
 0x3f1   :  { %v3911_v59 = vpop.f32.mrf.mxu0 }
 0x3f2   :  { %v5493_v26 = vadd.f32 %v1657_v24, %v1585_v45  ;;  %v3912_v58 = vadd.f32 %v3911_v59, %v3910_v35  ;;  %v1662_v14 = vpop.f32.mrf.mxu1  ;;  %v1751_v17 = vmul.f32 %v5503_v25, %v1681_v3  ;;  %v1763_v24 = vadd.f32 %v1762_v30, %v1761_v28 }
 0x3f3   :  { %v3913_v4 = vpop.f32.mrf.mxu0 }
 0x3f4   :  { %v1590_v29 = vadd.f32 %v3912_v58, %v5456_v12  ;;  %v4120_v10 = vpop.f32.mrf.mxu1  ;;  %v1682_v46 = vmax.f32 %v5493_v26, 0.0  ;;  %v1764_v49 = vsel %vm426_vm3, %v1751_v17, 0.0  ;;  %v1745_v7 = vpop.permute.xlu0 %1744 }
 0x3f5   :  { %v3914_v61 = vpop.f32.mrf.mxu0  ;;  %v1740_v10 = vpop.permute.xlu1 %1739 }
 0x3f6   :  { %v5510_v16 = vadd.f32 %v1662_v14, %v1590_v29  ;;  %v3915_v32 = vadd.f32 %v3914_v61, %v3913_v4  ;;  %v1665_v22 = vpop.f32.mrf.mxu1  ;;  %v1752_v53 = vmul.f32 %v5512_v43, %v1682_v46  ;;  %v1765_v14 = vadd.f32 %v1764_v49, %v1763_v24 }
 0x3f7   :  { %v3916_v11 = vpop.f32.mrf.mxu0 }
 0x3f8   :  { %v1683_v38 = vmax.f32 %v5510_v16, 0.0  ;;  %v1593_v48 = vadd.f32 %v3915_v32, %v5456_v12  ;;  %v4121_v60 = vpop.f32.mrf.mxu1  ;;  %v1766_v45 = vsel %vm426_vm3, %v1752_v53, 0.0 }
 0x3f9   :  { %v3917_v9 = vpop.f32.mrf.mxu0  ;;  %v1767_v41 = vadd.f32 %v1766_v45, %v1765_v14 }
 0x3fa   :  { %v1666_v50 = vadd.f32 %v1665_v22, %v1593_v48  ;;  %v3918_v27 = vadd.f32 %v3917_v9, %v3916_v11  ;;  %v1670_v31 = vpop.f32.mrf.mxu1  ;;  %v1753_v39 = vmul.f32 %v5529_v5, %v1683_v38 }
 0x3fb   :  { %v3919_v40 = vpop.f32.mrf.mxu0 }
 0x3fc   :  { %v1684_v20 = vmax.f32 %v1666_v50, 0.0  ;;  %v1598_v57 = vadd.f32 %v3918_v27, %v5456_v12  ;;  %v4124_v56 = vpop.f32.mrf.mxu1  ;;  %v1768_v62 = vsel %vm426_vm3, %v1753_v39, 0.0 }
 0x3fd   :  { %v3920_v35 = vpop.f32.mrf.mxu0  ;;  %v1769_v22 = vadd.f32 %v1768_v62, %v1767_v41 }
 0x3fe   :  { %v1754_v15 = vmul.f32 %v5536_v19, %v1684_v20  ;;  %v1671_v33 = vadd.f32 %v1670_v31, %v1598_v57  ;;  %v3921_v59 = vadd.f32 %v3920_v35, %v3919_v40  ;;  %v1673_v58 = vpop.f32.mrf.mxu1 }
 0x400   :  { %v1685_v4 = vmax.f32 %v1671_v33, 0.0  ;;  %v1601_v2 = vadd.f32 %v3921_v59, %v5456_v12  ;;  %v4125_v29 = vpop.f32.mrf.mxu1  ;;  %v1770_v61 = vsel %vm426_vm3, %v1754_v15, 0.0 }
 0x401   :  { %v1771_v55 = vadd.f32 %v1770_v61, %v1769_v22 }
 0x402   :  { %v1755_v18 = vmul.f32 %v1740_v10, %v1685_v4  ;;  %v1674_v32 = vadd.f32 %v1673_v58, %v1601_v2 }
 0x404   :  { %v1772_v42 = vsel %vm426_vm3, %v1755_v18, 0.0  ;;  %v1686_v11 = vmax.f32 %v1674_v32, 0.0 }
 0x405   :  { %v1773_v48 = vadd.f32 %v1772_v42, %v1771_v55 }
 0x406   :  { %v1756_v17 = vmul.f32 %v1745_v7, %v1686_v11 }
 0x408   :  { %v1774_v60 = vsel %vm426_vm3, %v1756_v17, 0.0 }
 0x409   :  { %v1775_v36 = vadd.f32 %v1774_v60, %v1773_v48 }
 0x40b   :  { %v1776_v9 = vrot.slane %v1775_v36, 4 }
 0x40d   :  { %v1777_v12 = vadd.f32 %v1776_v9, %v1775_v36 }
 0x40f   :  { %v1778_v30 = vrot.slane %v1777_v12, 2 }
 0x411   :  { %v1779_v53 = vadd.f32 %v1778_v30, %v1777_v12 }
 0x413   :  { %v1780_v50 = vrot.slane %v1779_v53, 1 }
 0x415   :  { %v1781_v27 = vadd.f32 %v1780_v50, %v1779_v53 }
 0x417   :  { %v1782_v31 = vmul.f32 0.015151516, %v1781_v27 }
 0x419   :  { %v5547_v28 = vsub.f32 %v1677_v47, %v1782_v31  ;;  %v5551_v40 = vsub.f32 %v1678_v37, %v1782_v31  ;;  %v5555_v49 = vsub.f32 %v1679_v52, %v1782_v31  ;;  %v5559_v39 = vsub.f32 %v1680_v54, %v1782_v31 }
 0x41a   :  { %v5563_v57 = vsub.f32 %v1681_v3, %v1782_v31  ;;  %v1788_v37 = vsub.f32 %v1682_v46, %v1782_v31  ;;  %v1789_v1 = vsub.f32 %v1683_v38, %v1782_v31  ;;  %v1790_v26 = vsub.f32 %v1684_v20, %v1782_v31 }
 0x41b   :  { %v1793_v63 = vmul.f32 %v5547_v28, %v5547_v28  ;;  %v1794_v21 = vmul.f32 %v5551_v40, %v5551_v40  ;;  %v1795_v51 = vmul.f32 %v5555_v49, %v5555_v49  ;;  %v1796_v47 = vmul.f32 %v5559_v39, %v5559_v39 }
 0x41c   :  { %v1797_v52 = vmul.f32 %v5563_v57, %v5563_v57  ;;  %v1798_v46 = vmul.f32 %v1788_v37, %v1788_v37  ;;  %v1791_v16 = vsub.f32 %v1685_v4, %v1782_v31  ;;  %v1799_v38 = vmul.f32 %v1789_v1, %v1789_v1 }
 0x41d   :  { %v1803_v34 = vmul.f32 %v1793_v63, %v5461_v44  ;;  %v1804_v54 = vmul.f32 %v1794_v21, %v5468_v23  ;;  %v1805_v3 = vmul.f32 %v1795_v51, %v5480_v13  ;;  %v1806_v56 = vmul.f32 %v1796_v47, %v5487_v0  ;;  %v3726_v21 = vld [vmem:[%s6102_s10] ss:$0 sm:$0xff] }
 0x41e   :  { %v1807_v15 = vmul.f32 %v1797_v52, %v5503_v25  ;;  %v1792_v59 = vsub.f32 %v1686_v11, %v1782_v31  ;;  %v1800_v23 = vmul.f32 %v1790_v26, %v1790_v26  ;;  %v1808_v13 = vmul.f32 %v1798_v46, %v5512_v43 }
 0x41f   :  { %v1813_v24 = vsel %vm426_vm3, %v1803_v34, 0.0  ;;  %v1814_v35 = vsel %vm426_vm3, %v1804_v54, 0.0  ;;  %v1816_v33 = vsel %vm426_vm3, %v1805_v3, 0.0  ;;  %v1818_v20 = vsel %vm426_vm3, %v1806_v56, 0.0 }
 0x420   :  { %v1815_v45 = vadd.f32 %v1814_v35, %v1813_v24  ;;  %v1801_v0 = vmul.f32 %v1791_v16, %v1791_v16  ;;  %v1809_v14 = vmul.f32 %v1799_v38, %v5529_v5  ;;  %v1820_v62 = vsel %vm426_vm3, %v1807_v15, 0.0 }
 0x421   :  { %v1802_v4 = vmul.f32 %v1792_v59, %v1792_v59  ;;  %v1810_v29 = vmul.f32 %v1800_v23, %v5536_v19  ;;  %v1822_v25 = vsel %vm426_vm3, %v1808_v13, 0.0 }
 0x422   :  { %v1817_v44 = vadd.f32 %v1816_v33, %v1815_v45  ;;  %v1811_v61 = vmul.f32 %v1801_v0, %v1740_v10  ;;  %v1824_v18 = vsel %vm426_vm3, %v1809_v14, 0.0 }
 0x423   :  { %v1812_v43 = vmul.f32 %v1802_v4, %v1745_v7  ;;  %v1826_v22 = vsel %vm426_vm3, %v1810_v29, 0.0  ;;  %v3725_v7 = vld [vmem:[%s6101_s9] ss:$0 sm:$0xff]  ;;  %v4352_v29 = vld [vmem:[%s6100_s12 + $0x28] sm:$0xff]  }
 0x424   :  { %v1819_v58 = vadd.f32 %v1818_v20, %v1817_v44  ;;  %v1828_v11 = vsel %vm426_vm3, %v1811_v61, 0.0  ;;  %v4351_v4 = vld [vmem:[%s6100_s12 + $0x20] sm:$0xff]   ;;  %v2136_v61 = vld [vmem:[%s6103_s13 + $0xd0] sm:$0xff] }
 0x425   :  { %v1830_v55 = vsel %vm426_vm3, %v1812_v43, 0.0  ;;  %v2140_v43 = vld [vmem:[%s6103_s13 + $0xf0] sm:$0xff] }
 0x426   :  { %v1821_v2 = vadd.f32 %v1820_v62, %v1819_v58  ;;  %v4348_v62 = vld [vmem:[%s6100_s12 + $0x8] sm:$0xff]  }
 0x428   :  { %v1823_v41 = vadd.f32 %v1822_v25, %v1821_v2  ;;  %v4350_v2 = vld [vmem:[%s6100_s12 + $0x18] sm:$0xff]   ;;  %v2134_v25 = vld [vmem:[%s6103_s13 + $0xc0] sm:$0xff] }
 0x42a   :  { %v1825_v32 = vadd.f32 %v1824_v18, %v1823_v41  ;;  %v2138_v41 = vld [vmem:[%s6103_s13 + $0xe0] sm:$0xff] }
 0x42b   :  { %v3771_v18 = vcombine.low %v2134_v25, %v2138_v41 }
 0x42c   :  { %v1827_v42 = vadd.f32 %v1826_v22, %v1825_v32  ;;  %v3772_v32 = vcombine.high %v2134_v25, %v2138_v41  ;;  %v3775_v22 = vcombine.low %v2136_v61, %v2140_v43  ;;  %v2111_v41 = vld [vmem:[%s6103_s13 + $0x8] sm:$0xff] }
 0x42e   :  { %v1829_v5 = vadd.f32 %v1828_v11, %v1827_v42  ;;  %v3776_v42 = vcombine.high %v2136_v61, %v2140_v43  ;;  %v2126_v11 = vld [vmem:[%s6103_s13 + $0x80] sm:$0xff]  ;;  %v2115_v61 = vld [vmem:[%s6103_s13 + $0x28] sm:$0xff] }
 0x430   :  { %v1831_v17 = vadd.f32 %v1830_v55, %v1829_v5  ;;  %v2130_v5 = vld [vmem:[%s6103_s13 + $0xa0] sm:$0xff]  ;;  %v2128_v55 = vld [vmem:[%s6103_s13 + $0x90] sm:$0xff] }
 0x432   :  { %v1832_v48 = vrot.slane %v1831_v17, 4 }
 0x434   :  { %v1833_v60 = vadd.f32 %v1832_v48, %v1831_v17  ;;  %v3763_v17 = vcombine.low %v2126_v11, %v2130_v5  ;;  %v3764_v48 = vcombine.high %v2126_v11, %v2130_v5  ;;  %v2141_v11 = vld [vmem:[%s6103_s13 + $0xf8] sm:$0xff]  ;;  %v3749_v5 = vcombine.low %v2111_v41, %v2115_v61 }
 0x436   :  { %v1834_v19 = vrot.slane %v1833_v60, 2 }
 0x438   :  { %v1835_v36 = vadd.f32 %v1834_v19, %v1833_v60  ;;  %v2132_v60 = vld [vmem:[%s6103_s13 + $0xb0] sm:$0xff] }
 0x439   :  { %v3767_v19 = vcombine.low %v2128_v55, %v2132_v60 }
 0x43a   :  { %v1836_v9 = vrot.slane %v1835_v36, 1 }
 0x43c   :  { %v1837_v12 = vadd.f32 %v1836_v9, %v1835_v36  ;;  %v3768_v36 = vcombine.high %v2128_v55, %v2132_v60  ;;  %v2118_v9 = vld [vmem:[%s6103_s13 + $0x40] sm:$0xff] }
 0x43e   :  { %v1838_v10 = vmul.f32 0.015151516, %v1837_v12  ;;  %v2122_v12 = vld [vmem:[%s6103_s13 + $0x60] sm:$0xff] }
 0x440   :  { %v1839_v30 = vadd.f32 1e-05, %v1838_v10  ;;  %v2120_v10 = vld [vmem:[%s6103_s13 + $0x50] sm:$0xff] }
 0x442   :  { %4425 = vrsqrt.f32 %v1839_v30  ;;  %v3755_v30 = vcombine.low %v2118_v9, %v2122_v12 }
 0x44f   :  { %v4426_v53 = vpop.eup %4425 }
 0x450   :  { %v1848_v50 = vmul.f32 %v4426_v53, %v1790_v26  ;;  %v1849_v27 = vmul.f32 %v4426_v53, %v1791_v16  ;;  %v1850_v31 = vmul.f32 %v4426_v53, %v1792_v59  ;;  %v1847_v63 = vmul.f32 %v4426_v53, %v1789_v1 }
 0x451   :  { %v1845_v51 = vmul.f32 %v4426_v53, %v5563_v57  ;;  %v1846_v47 = vmul.f32 %v4426_v53, %v1788_v37  ;;  %v1843_v24 = vmul.f32 %v4426_v53, %v5555_v49  ;;  %v1844_v26 = vmul.f32 %v4426_v53, %v5559_v39 }
 0x452   :  { %v1866_v52 = vmul.f32 %v3725_v7, %v1849_v27  ;;  %v1867_v34 = vmul.f32 %v3725_v7, %v1850_v31  ;;  %v1864_v54 = vmul.f32 %v3725_v7, %v1847_v63  ;;  %v1865_v3 = vmul.f32 %v3725_v7, %v1848_v50  ;;  %v2110_v31 = vld [vmem:[%s6103_s13] sm:$0xff] }
 0x453   :  { %v1862_v46 = vmul.f32 %v3725_v7, %v1845_v51  ;;  %v1863_v56 = vmul.f32 %v3725_v7, %v1846_v47  ;;  %v1841_v15 = vmul.f32 %v4426_v53, %v5547_v28  ;;  %v1842_v57 = vmul.f32 %v4426_v53, %v5551_v40  ;;  %v2114_v63 = vld [vmem:[%s6103_s13 + $0x20] sm:$0xff] }
 0x454   :  { %v1883_v35 = vadd.f32 %v3726_v21, %v1866_v52  ;;  %v1884_v45 = vadd.f32 %v3726_v21, %v1867_v34  ;;  %v1881_v1 = vadd.f32 %v3726_v21, %v1864_v54  ;;  %v1882_v16 = vadd.f32 %v3726_v21, %v1865_v3  ;;  %v2116_v52 = vld [vmem:[%s6103_s13 + $0x30] sm:$0xff]  ;;  %v2135_v3 = vld [vmem:[%s6103_s13 + $0xc8] sm:$0xff] }
 0x455   :  { %v1879_v37 = vadd.f32 %v3726_v21, %v1862_v46  ;;  %v1880_v33 = vadd.f32 %v3726_v21, %v1863_v56  ;;  %v1860_v44 = vmul.f32 %v3725_v7, %v1843_v24  ;;  %v1861_v59 = vmul.f32 %v3725_v7, %v1844_v26  ;;  %v2139_v46 = vld [vmem:[%s6103_s13 + $0xe8] sm:$0xff] }
 0x456   :  { %v1889_v38 = vpack.c.bf16 %v1884_v45, %v1883_v35  ;;  %v1888_v23 = vpack.c.bf16 %v1882_v16, %v1881_v1  ;;  %v1858_v13 = vmul.f32 %v3725_v7, %v1841_v15  ;;  %v1859_v49 = vmul.f32 %v3725_v7, %v1842_v57  ;;  %v2124_v7 = vld [vmem:[%s6103_s13 + $0x70] sm:$0xff] }
 0x457   :  { %v1887_v58 = vpack.c.bf16 %v1880_v33, %v1879_v37  ;;  %v1877_v0 = vadd.f32 %v3726_v21, %v1860_v44  ;;  %v1878_v28 = vadd.f32 %v3726_v21, %v1861_v59  ;;  %v3756_v53 = vcombine.high %v2118_v9, %v2122_v12  ;;  %v2125_v9 = vld [vmem:[%s6103_s13 + $0x78] sm:$0xff] }
 0x458   :  { %4126 = vmatprep.subr.bf16.mxu0 %v1889_v38  ;;  %4140 = vmatprep.subr.bf16.mxu1 %v1889_v38  ;;  %v1875_v39 = vadd.f32 %v3726_v21, %v1858_v13  ;;  %v1876_v20 = vadd.f32 %v3726_v21, %v1859_v49  ;;  %v3759_v50 = vcombine.low %v2120_v10, %v2124_v7  ;;  %v2112_v21 = vld [vmem:[%s6103_s13 + $0x10] sm:$0xff]  ;;  %v2127_v49 = vld [vmem:[%s6103_s13 + $0x88] sm:$0xff] }
 0x459   :  { %4127 = vmatpush3.bf16.msra.mxu0 %v1889_v38  ;;  %4141 = vmatpush3.bf16.msra.mxu1 %v1889_v38  ;;  %v1886_v40 = vpack.c.bf16 %v1878_v28, %v1877_v0  ;;  %v3760_v27 = vcombine.high %v2120_v10, %v2124_v7  ;;  %v3747_v51 = vcombine.low %v2110_v31, %v2114_v63 }
 0x45a   :  { %4128 = vmatprep.subr.bf16.mxu0 %v1888_v23  ;;  %4142 = vmatprep.subr.bf16.mxu1 %v1888_v23  ;;  %v1885_v14 = vpack.c.bf16 %v1876_v20, %v1875_v39  ;;  %v3748_v47 = vcombine.high %v2110_v31, %v2114_v63  ;;  %v3751_v34 = vcombine.low %v2112_v21, %v2116_v52  ;;  %v2131_v39 = vld [vmem:[%s6103_s13 + $0xa8] sm:$0xff] }
 0x45b   :  { %v3752_v54 = vcombine.high %v2112_v21, %v2116_v52  ;;  %v3773_v56 = vcombine.low %v2135_v3, %v2139_v46  ;;  %v3774_v24 = vcombine.high %v2135_v3, %v2139_v46  ;;  %v3766_v28 = vcombine.high %v2127_v49, %v2131_v39 }
 0x45d   :  { %4129 = vmatpush3.bf16.msra.mxu0 %v1888_v23  ;;  %4143 = vmatpush3.bf16.msra.mxu1 %v1888_v23 }
 0x45e   :  { %4130 = vmatprep.subr.bf16.mxu0 %v1887_v58  ;;  %4144 = vmatprep.subr.bf16.mxu1 %v1887_v58 }
 0x461   :  { %4131 = vmatpush3.bf16.msra.mxu0 %v1887_v58  ;;  %4145 = vmatpush3.bf16.msra.mxu1 %v1887_v58 }
 0x462   :  { %4132 = vmatprep.subr.bf16.mxu0 %v1886_v40  ;;  %4146 = vmatprep.subr.bf16.mxu1 %v1886_v40 }
 0x465   :  { %4133 = vmatpush3.bf16.msra.mxu0 %v1886_v40  ;;  %4147 = vmatpush3.bf16.msra.mxu1 %v1886_v40 }
 0x466   :  { %4134 = vmatprep.subr.bf16.mxu0 %v1885_v14  ;;  %4148 = vmatprep.subr.bf16.mxu1 %v1885_v14 }
 0x469   :  { %4135 = vmatpush3.bf16.msra.mxu0 %v1885_v14  ;;  %4149 = vmatpush3.bf16.msra.mxu1 %v1885_v14 }
 0x46a   :  { %4154 = vmatprep.subr.bf16.mxu0 %v1889_v38  ;;  %2316 = vmatprep.subr.bf16.mxu1 %v3772_v32 }
 0x46c   :  { %4137 = vmatmul.mubr.msk.bf16.vlgmr.msra.gmra.mxu0 %vm1904_vm5, %v4348_v62  ;;  %4151 = vmatmul.mubr.msk.bf16.vlgmr.msra.gmra.mxu1 %vm1904_vm5, %v4350_v2  ;;  %v3765_v2 = vcombine.low %v2127_v49, %v2131_v39 }
 0x46d   :  { %4155 = vmatpush3.bf16.msra.mxu0 %v1889_v38  ;;  %4164 = vmatprep.mubr.msk.bf16.mxu0 %vm1904_vm5, %v4351_v4 }
 0x46e   :  { %4156 = vmatprep.subr.bf16.mxu0 %v1888_v23  ;;  %2340 = vmatprep.mubr.bf16.mxu1 %v6144_v8 }
 0x46f   :  { %2317 = vmatpush1.bf16.msra.mxu1 %v3771_v18 }
 0x470   :  { %2318 = vmatprep.subr.bf16.mxu1 %v3764_v48  ;;  %v2133_v48 = vld [vmem:[%s6103_s13 + $0xb8] sm:$0xff] }
 0x471   :  { %4157 = vmatpush3.bf16.msra.mxu0 %v1888_v23 }
 0x472   :  { %4158 = vmatprep.subr.bf16.mxu0 %v1887_v58 }
 0x473   :  { %2319 = vmatpush1.bf16.msra.mxu1 %v3763_v17  ;;  %v2129_v17 = vld [vmem:[%s6103_s13 + $0x98] sm:$0xff] }
 0x474   :  { %2320 = vmatprep.subr.bf16.mxu1 %v3756_v53  ;;  %v3769_v12 = vcombine.low %v2129_v17, %v2133_v48  ;;  %v2117_v53 = vld [vmem:[%s6103_s13 + $0x38] sm:$0xff] }
 0x475   :  { %4159 = vmatpush3.bf16.msra.mxu0 %v1887_v58 }
 0x476   :  { %4160 = vmatprep.subr.bf16.mxu0 %v1886_v40 }
 0x477   :  { %2321 = vmatpush1.bf16.msra.mxu1 %v3755_v30  ;;  %v2113_v30 = vld [vmem:[%s6103_s13 + $0x18] sm:$0xff] }
 0x478   :  { %2322 = vmatprep.subr.bf16.mxu1 %v3748_v47 }
 0x479   :  { %4161 = vmatpush3.bf16.msra.mxu0 %v1886_v40  ;;  %v2123_v40 = vld [vmem:[%s6103_s13 + $0x68] sm:$0xff] }
 0x47a   :  { %4162 = vmatprep.subr.bf16.mxu0 %v1885_v14 }
 0x47b   :  { %2323 = vmatpush1.bf16.msra.mxu1 %v3747_v51 }
 0x47c   :  { %2369 = vmatprep.subr.bf16.mxu1 %v3774_v24  ;;  %v2533_v24 = vld [vmem:[%s6105_s14 + $0x68] sm:$0xff] }
 0x47d   :  { %4163 = vmatpush3.bf16.msra.mxu0 %v1885_v14  ;;  %v2119_v14 = vld [vmem:[%s6103_s13 + $0x48] sm:$0xff] }
 0x47e   :  { %2422 = vmatprep.subr.bf16.mxu0 %v3776_v42  ;;  %v3758_v25 = vcombine.high %v2119_v14, %v2123_v40  ;;  %v3757_v32 = vcombine.low %v2119_v14, %v2123_v40  ;;  %v2137_v42 = vld [vmem:[%s6103_s13 + $0xd8] sm:$0xff]  ;;  %v2528_v14 = vld [vmem:[%s6105_s14 + $0x40] sm:$0xff] }
 0x47f   :  { %v3778_v55 = vcombine.high %v2137_v42, %v2141_v11  ;;  %v3777_v60 = vcombine.low %v2137_v42, %v2141_v11  ;;  %v2532_v40 = vld [vmem:[%s6105_s14 + $0x60] sm:$0xff] }
 0x480   :  { %4165 = vmatmul.mubr.msk.bf16.vlgmr.msra.gmra.mxu0 %vm1904_vm5, %v4352_v29 }
 0x481   :  { %2446 = vmatprep.mubr.bf16.mxu0 %v6144_v8  ;;  %2423 = vmatpush1.bf16.msra.mxu0 %v3775_v22  ;;  %v3750_v22 = vcombine.high %v2111_v41, %v2115_v61 }
 0x482   :  { %2424 = vmatprep.subr.bf16.mxu0 %v3768_v36  ;;  %v2121_v36 = vld [vmem:[%s6103_s13 + $0x58] sm:$0xff] }
 0x483   :  { %v3762_v10 = vcombine.high %v2121_v36, %v2125_v9  ;;  %v3761_v7 = vcombine.low %v2121_v36, %v2125_v9 }
 0x485   :  { %2425 = vmatpush1.bf16.msra.mxu0 %v3767_v19  ;;  %v3770_v19 = vcombine.high %v2129_v17, %v2133_v48 }
 0x486   :  { %2426 = vmatprep.subr.bf16.mxu0 %v3760_v27  ;;  %v3753_v27 = vcombine.low %v2113_v30, %v2117_v53 }
 0x489   :  { %2427 = vmatpush1.bf16.msra.mxu0 %v3759_v50  ;;  %v3754_v50 = vcombine.high %v2113_v30, %v2117_v53  ;;  %v4353_v30 = vld [vmem:[%s6104_s16 + $0x78] sm:$0xff]  }
 0x48a   :  { %2428 = vmatprep.subr.bf16.mxu0 %v3752_v54 }
 0x48d   :  { %2429 = vmatpush1.bf16.msra.mxu0 %v3751_v34 }
 0x52c   :  { %v4138_v26 = vpop.f32.mrf.mxu0  ;;  %v4152_v45 = vpop.f32.mrf.mxu1 }
 0x52d   :  { %v2032_v4 = vmax.f32 %v4138_v26, %v4152_v45  ;;  %v2537_v45 = vld [vmem:[%s6105_s14 + $0x88] sm:$0xff] }
 0x52e   :  { %v1945_v35 = vpop.f32.mrf.mxu0  ;;  %v2015_v16 = vpop.f32.mrf.mxu1 }
 0x52f   :  { %v2030_v59 = vmax.f32 %v1945_v35, %v2015_v16  ;;  %v2548_v16 = vld [vmem:[%s6105_s14 + $0xe0] sm:$0xff] }
 0x530   :  { %v4139_v1 = vpop.f32.mrf.mxu0  ;;  %v4153_v15 = vpop.f32.mrf.mxu1 }
 0x531   :  { %v2033_v62 = vmax.f32 %v4139_v1, %v4153_v15  ;;  %v2544_v1 = vld [vmem:[%s6105_s14 + $0xc0] sm:$0xff] }
 0x532   :  { %v1948_v38 = vpop.f32.mrf.mxu0  ;;  %v2018_v37 = vpop.f32.mrf.mxu1 }
 0x533   :  { %v2031_v23 = vmax.f32 %v1948_v38, %v2018_v37  ;;  %v2541_v38 = vld [vmem:[%s6105_s14 + $0xa8] sm:$0xff] }
 0x534   :  { %v2545_v37 = vld [vmem:[%s6105_s14 + $0xc8] sm:$0xff] }
 0x540   :  { %v4166_v57 = vpop.f32.mrf.mxu0 }
 0x541   :  { %v2106_v18 = vmax.f32 %v2032_v4, %v4166_v57 }
 0x542   :  { %v2089_v33 = vpop.f32.mrf.mxu0 }
 0x543   :  { %v2104_v20 = vmax.f32 %v2030_v59, %v2089_v33  ;;  %v2549_v33 = vld [vmem:[%s6105_s14 + $0xe8] sm:$0xff]  ;;  %v2540_v59 = vld [vmem:[%s6105_s14 + $0xa0] sm:$0xff] }
 0x544   :  { %v4167_v44 = vpop.f32.mrf.mxu0 }
 0x545   :  { %v2107_v29 = vmax.f32 %v2033_v62, %v4167_v44  ;;  %v2536_v44 = vld [vmem:[%s6105_s14 + $0x80] sm:$0xff] }
 0x546   :  { %v2092_v13 = vpop.f32.mrf.mxu0 }
 0x547   :  { %v2105_v58 = vmax.f32 %v2031_v23, %v2092_v13  ;;  %v2109_v43 = vpack.c.bf16 %v2107_v29, %v2106_v18  ;;  %v2521_v23 = vld [vmem:[%s6105_s14 + $0x8] sm:$0xff]  ;;  %v2520_v18 = vld [vmem:[%s6105_s14] sm:$0xff] }
 0x548   :  { %v2525_v13 = vld [vmem:[%s6105_s14 + $0x28] sm:$0xff] }
 0x549   :  { %v2108_v0 = vpack.c.bf16 %v2105_v58, %v2104_v20 }
 0x54b   :  { %3779 = vmatmul.mubr.msk.bf16.vlgmr.msra.gmra.mxu1 %vm426_vm3, %v2108_v0  ;;  %3783 = vmatmul.mubr.msk.bf16.vlgmr.msra.gmra.mxu0 %vm426_vm3, %v2108_v0 }
 0x54c   :  { %2370 = vmatpush1.bf16.msra.mxu1 %v3773_v56  ;;  %2350 = vmatprep.mubr.bf16.mxu1 %v6144_v8  ;;  %v2529_v56 = vld [vmem:[%s6105_s14 + $0x48] sm:$0xff] }
 0x54d   :  { %2371 = vmatprep.subr.bf16.mxu1 %v3766_v28  ;;  %2456 = vmatprep.mubr.bf16.mxu0 %v6144_v8 }
 0x550   :  { %2372 = vmatpush1.bf16.msra.mxu1 %v3765_v2 }
 0x551   :  { %2373 = vmatprep.subr.bf16.mxu1 %v3758_v25 }
 0x553   :  { %3780 = vmatmul.mubr.msk.bf16.gmra.mxu1 %vm426_vm3, %v2109_v43  ;;  %3784 = vmatmul.mubr.msk.bf16.gmra.mxu0 %vm426_vm3, %v2109_v43 }
 0x554   :  { %2374 = vmatpush1.bf16.msra.mxu1 %v3757_v32  ;;  %2393 = vmatprep.mubr.bf16.mxu1 %v6144_v8  ;;  %v2524_v32 = vld [vmem:[%s6105_s14 + $0x20] sm:$0xff] }
 0x555   :  { %2375 = vmatprep.subr.bf16.mxu1 %v3750_v22  ;;  %2637 = vmatprep.mubr.bf16.mxu0 %v6144_v8 }
 0x558   :  { %2376 = vmatpush1.bf16.msra.mxu1 %v3749_v5 }
 0x559   :  { %2475 = vmatprep.subr.bf16.mxu1 %v3778_v55 }
 0x55b   :  { %3781 = vmatmul.mubr.msk.bf16.vlgmr.msra.gmra.mxu1 %vm426_vm3, %v2108_v0 }
 0x55c   :  { %2476 = vmatpush1.bf16.msra.mxu1 %v3777_v60  ;;  %2403 = vmatprep.mubr.bf16.mxu1 %v6144_v8 }
 0x55d   :  { %2477 = vmatprep.subr.bf16.mxu1 %v3770_v19 }
 0x560   :  { %2478 = vmatpush1.bf16.msra.mxu1 %v3769_v12 }
 0x561   :  { %2479 = vmatprep.subr.bf16.mxu1 %v3762_v10 }
 0x563   :  { %3782 = vmatmul.mubr.msk.bf16.gmra.mxu1 %vm426_vm3, %v2109_v43 }
 0x564   :  { %2480 = vmatpush1.bf16.msra.mxu1 %v3761_v7  ;;  %2499 = vmatprep.mubr.bf16.mxu1 %v6144_v8 }
 0x565   :  { %2481 = vmatprep.subr.bf16.mxu1 %v3754_v50 }
 0x568   :  { %2482 = vmatpush1.bf16.msra.mxu1 %v3753_v27 }
 0x56b   :  { %3785 = vmatmul.mubr.msk.bf16.vlgmr.msra.gmra.mxu1 %vm426_vm3, %v2108_v0 }
 0x56c   :  { %2509 = vmatprep.mubr.bf16.mxu1 %v6144_v8 }
 0x573   :  { %3786 = vmatmul.mubr.msk.bf16.gmra.mxu1 %vm426_vm3, %v2109_v43 }
 0x574   :  { %2719 = vmatprep.mubr.bf16.mxu1 %v6144_v8 }
 0x60b   :  { %v2342_v31 = vpop.f32.mrf.mxu1  ;;  %v2448_v63 = vpop.f32.mrf.mxu0 }
 0x60c   :  { %v2552_v9 = vmul.f32 %v2520_v18, %v2342_v31  ;;  %v2556_v12 = vmul.f32 %v2524_v32, %v2448_v63  ;;  %v5794_v31 = vld [vmem:[%s6106_s15] sm:$0x1]  ;;  %v4354_v63 = vld [vmem:[%s6104_s16 + $0x38] sm:$0xff]   ;;  %v2550_v18 = vld [vmem:[%s6105_s14 + $0xf0] sm:$0xff] }
 0x60d   :  { %v2344_v21 = vpop.f32.mrf.mxu1  ;;  %v2450_v51 = vpop.f32.mrf.mxu0  ;;  %v2543_v32 = vld [vmem:[%s6105_s14 + $0xb8] sm:$0xff] }
 0x60e   :  { %v2553_v43 = vmul.f32 %v2521_v23, %v2344_v21  ;;  %v2557_v22 = vmul.f32 %v2525_v13, %v2450_v51  ;;  %v4355_v21 = vld [vmem:[%s6104_s16 + $0x70] sm:$0xff]   ;;  %v4359_v13 = vld [vmem:[%s6104_s16 + $0x60] sm:$0xff]  }
 0x60f   :  { %v2346_v47 = vpop.f32.mrf.mxu1  ;;  %v2452_v52 = vpop.f32.mrf.mxu0 }
 0x610   :  { %v2560_v5 = vmul.f32 %v2528_v14, %v2346_v47  ;;  %v2564_v55 = vmul.f32 %v2532_v40, %v2452_v52  ;;  %v2531_v47 = vld [vmem:[%s6105_s14 + $0x58] sm:$0xff]  ;;  %v2546_v52 = vld [vmem:[%s6105_s14 + $0xd0] sm:$0xff]  ;;  %v4360_v14 = vld [vmem:[%s6104_s16 + $0x20] sm:$0xff]  }
 0x611   :  { %v2348_v34 = vpop.f32.mrf.mxu1  ;;  %v2454_v54 = vpop.f32.mrf.mxu0  ;;  %v4361_v40 = vld [vmem:[%s6104_s16 + $0x58] sm:$0xff]  }
 0x612   :  { %v2561_v49 = vmul.f32 %v2529_v56, %v2348_v34  ;;  %v2565_v39 = vmul.f32 %v2533_v24, %v2454_v54  ;;  %v2584_v53 = vpack.c.bf16 %v2560_v5, %v2552_v9  ;;  %v2588_v7 = vpack.c.bf16 %v2564_v55, %v2556_v12  ;;  %v2539_v34 = vld [vmem:[%s6105_s14 + $0x98] sm:$0xff]  ;;  %v2538_v56 = vld [vmem:[%s6105_s14 + $0x90] sm:$0xff]  ;;  %v4357_v24 = vld [vmem:[%s6104_s16 + $0x68] sm:$0xff]  }
 0x613   :  { %v2352_v3 = vpop.f32.mrf.mxu1  ;;  %v2458_v46 = vpop.f32.mrf.mxu0  ;;  %v4369_v5 = vld [vmem:[%s6104_s16 + $0x48] sm:$0xff]   ;;  %v2527_v55 = vld [vmem:[%s6105_s14 + $0x38] sm:$0xff] }
 0x614   :  { %v2568_v25 = vmul.f32 %v2536_v44, %v2352_v3  ;;  %v2572_v41 = vmul.f32 %v2540_v59, %v2458_v46  ;;  %v2585_v19 = vpack.c.bf16 %v2561_v49, %v2553_v43  ;;  %v2589_v36 = vpack.c.bf16 %v2565_v39, %v2557_v22  ;;  %v2547_v3 = vld [vmem:[%s6105_s14 + $0xd8] sm:$0xff]  ;;  %v4356_v46 = vld [vmem:[%s6104_s16 + $0x30] sm:$0xff]   ;;  %v4371_v12 = vld [vmem:[%s6104_s16 + $0x8] sm:$0xff]  }
 0x615   :  { %v2354_v26 = vpop.f32.mrf.mxu1  ;;  %v2460_v35 = vpop.f32.mrf.mxu0  ;;  %v2522_v44 = vld [vmem:[%s6105_s14 + $0x10] sm:$0xff]  ;;  %v2551_v22 = vld [vmem:[%s6105_s14 + $0xf8] sm:$0xff] }
 0x616   :  { %v2569_v62 = vmul.f32 %v2537_v45, %v2354_v26  ;;  %v2573_v2 = vmul.f32 %v2541_v38, %v2460_v35  ;;  %v2523_v26 = vld [vmem:[%s6105_s14 + $0x18] sm:$0xff] }
 0x617   :  { %v2356_v15 = vpop.f32.mrf.mxu1  ;;  %v2462_v57 = vpop.f32.mrf.mxu0 }
 0x618   :  { %v2576_v20 = vmul.f32 %v2544_v1, %v2356_v15  ;;  %v2580_v58 = vmul.f32 %v2548_v16, %v2462_v57  ;;  %v2530_v1 = vld [vmem:[%s6105_s14 + $0x50] sm:$0xff] }
 0x619   :  { %v2358_v0 = vpop.f32.mrf.mxu1  ;;  %v2464_v28 = vpop.f32.mrf.mxu0 }
 0x61a   :  { %v2577_v4 = vmul.f32 %v2545_v37, %v2358_v0  ;;  %v2581_v29 = vmul.f32 %v2549_v33, %v2464_v28  ;;  %v2592_v17 = vpack.c.bf16 %v2576_v20, %v2568_v25  ;;  %v2596_v48 = vpack.c.bf16 %v2580_v58, %v2572_v41  ;;  %v4358_v33 = vld [vmem:[%s6104_s16 + $0x28] sm:$0xff]   ;;  %v4365_v25 = vld [vmem:[%s6104_s16 + $0x50] sm:$0xff]  }
 0x61b   :  { %v5780_v61 = vpop.f32.mrf.mxu1 }
 0x61c   :  { %v2593_v42 = vpack.c.bf16 %v2577_v4, %v2569_v62  ;;  %v2597_v11 = vpack.c.bf16 %v2581_v29, %v2573_v2  ;;  %v2554_v0 = vmul.f32 %v2522_v44, %v5780_v61  ;;  %v4363_v29 = vld [vmem:[%s6104_s16 + $0x18] sm:$0xff]  }
 0x61d   :  { %v2397_v60 = vpop.f32.mrf.mxu1  ;;  %v2535_v61 = vld [vmem:[%s6105_s14 + $0x78] sm:$0xff] }
 0x61e   :  { %2617 = vmatprep.subr.bf16.mxu0 %v2593_v42  ;;  %2699 = vmatprep.subr.bf16.mxu1 %v2597_v11  ;;  %v2555_v59 = vmul.f32 %v2523_v26, %v2397_v60  ;;  %v4367_v42 = vld [vmem:[%s6104_s16 + $0x10] sm:$0xff]   ;;  %v4377_v26 = vld [vmem:[%s6104_s16 + $0xd8] sm:$0xff]  }
 0x61f   :  { %v2399_v10 = vpop.f32.mrf.mxu1  ;;  %2618 = vmatpush1.bf16.msra.mxu0 %v2592_v17  ;;  %2700 = vmatpush1.bf16.msra.mxu1 %v2596_v48  ;;  %v2542_v11 = vld [vmem:[%s6105_s14 + $0xb0] sm:$0xff] }
 0x620   :  { %2619 = vmatprep.subr.bf16.mxu0 %v2585_v19  ;;  %2701 = vmatprep.subr.bf16.mxu1 %v2589_v36  ;;  %v2562_v49 = vmul.f32 %v2530_v1, %v2399_v10  ;;  %v2534_v48 = vld [vmem:[%s6105_s14 + $0x70] sm:$0xff] }
 0x621   :  { %v2401_v50 = vpop.f32.mrf.mxu1  ;;  %v2526_v10 = vld [vmem:[%s6105_s14 + $0x30] sm:$0xff] }
 0x622   :  { %v2563_v16 = vmul.f32 %v2531_v47, %v2401_v50  ;;  %v2586_v62 = vpack.c.bf16 %v2562_v49, %v2554_v0  ;;  %v4364_v47 = vld [vmem:[%s6104_s16 + $0xb8] sm:$0xff]   ;;  %v4381_v1 = vld [vmem:[%s6104_s16 + $0xd0] sm:$0xff]  }
 0x623   :  { %v2405_v27 = vpop.f32.mrf.mxu1  ;;  %2620 = vmatpush1.bf16.msra.mxu0 %v2584_v53  ;;  %2702 = vmatpush1.bf16.msra.mxu1 %v2588_v7  ;;  %v4382_v0 = vld [vmem:[%s6104_s16 + $0x170] sm:$0xff]  }
 0x624   :  { %3956 = vmatprep.subr.bf16.mxu1 %v4353_v30  ;;  %v2570_v57 = vmul.f32 %v2538_v56, %v2405_v27  ;;  %v2587_v58 = vpack.c.bf16 %v2563_v16, %v2555_v59  ;;  %v4375_v56 = vld [vmem:[%s6104_s16] sm:$0xff]   ;;  %v4383_v16 = vld [vmem:[%s6104_s16 + $0x90] sm:$0xff]  }
 0x625   :  { %v2407_v51 = vpop.f32.mrf.mxu1 }
 0x626   :  { %3787 = vmatmul.mubr.msk.bf16.vlgmr.msra.gmra.mxu0 %vm2601_vm6, %v5794_v31  ;;  %3789 = vmatmul.mubr.msk.bf16.vlgmr.msra.gmra.mxu1 %vm2601_vm6, %v5794_v31  ;;  %v2571_v38 = vmul.f32 %v2539_v34, %v2407_v51  ;;  %v4368_v34 = vld [vmem:[%s6104_s16 + $0xb0] sm:$0xff]  }
 0x627   :  { %v2409_v54 = vpop.f32.mrf.mxu1  ;;  %2678 = vmatprep.mubr.bf16.mxu0 %v6144_v8  ;;  %3957 = vmatpush3.bf16.msra.mxu1 %v4354_v63 }
 0x628   :  { %3958 = vmatprep.subr.bf16.mxu1 %v4355_v21  ;;  %v2578_v35 = vmul.f32 %v2546_v52, %v2409_v54  ;;  %v4362_v21 = vld [vmem:[%s6104_s16 + $0xf8] sm:$0xff]   ;;  %v4366_v52 = vld [vmem:[%s6104_s16 + $0xf0] sm:$0xff]   ;;  %v4370_v54 = vld [vmem:[%s6104_s16 + $0xe8] sm:$0xff]  }
 0x629   :  { %v2411_v45 = vpop.f32.mrf.mxu1 }
 0x62a   :  { %v2579_v15 = vmul.f32 %v2547_v3, %v2411_v45  ;;  %v2594_v39 = vpack.c.bf16 %v2578_v35, %v2570_v57  ;;  %v4372_v3 = vld [vmem:[%s6104_s16 + $0xa8] sm:$0xff]   ;;  %v4378_v35 = vld [vmem:[%s6104_s16 + $0x178] sm:$0xff]   ;;  %v4389_v57 = vld [vmem:[%s6104_s16 + $0xc0] sm:$0xff]  }
 0x62b   :  { %v2501_v37 = vpop.f32.mrf.mxu1  ;;  %3959 = vmatpush3.bf16.msra.mxu1 %v4356_v46  ;;  %v4374_v46 = vld [vmem:[%s6104_s16 + $0xe0] sm:$0xff]   ;;  %v4379_v45 = vld [vmem:[%s6104_s16 + $0x98] sm:$0xff]  }
 0x62c   :  { %v2595_v23 = vpack.c.bf16 %v2579_v15, %v2571_v38  ;;  %3960 = vmatprep.subr.bf16.mxu1 %v4357_v24  ;;  %v2558_v63 = vmul.f32 %v2526_v10, %v2501_v37  ;;  %v4376_v24 = vld [vmem:[%s6104_s16 + $0xa0] sm:$0xff]   ;;  %v4385_v38 = vld [vmem:[%s6104_s16 + $0xc8] sm:$0xff]  }
 0x62d   :  { %v2503_v20 = vpop.f32.mrf.mxu1  ;;  %v4387_v15 = vld [vmem:[%s6104_s16 + $0x88] sm:$0xff]   ;;  %v4391_v37 = vld [vmem:[%s6104_s16 + $0x80] sm:$0xff]  }
 0x62e   :  { %2658 = vmatprep.subr.bf16.mxu0 %v2595_v23  ;;  %v2559_v30 = vmul.f32 %v2527_v55, %v2503_v20  ;;  %v4380_v20 = vld [vmem:[%s6104_s16 + $0x138] sm:$0xff]   ;;  %v4398_v55 = vld [vmem:[%s6104_s16 + $0x1f0] sm:$0xff]   ;;  %v4405_v10 = vld [vmem:[%s6104_s16 + $0x140] sm:$0xff]  }
 0x62f   :  { %v2505_v28 = vpop.f32.mrf.mxu1  ;;  %2659 = vmatpush1.bf16.msra.mxu0 %v2594_v39  ;;  %3961 = vmatpush3.bf16.msra.mxu1 %v4358_v33  ;;  %v4394_v33 = vld [vmem:[%s6104_s16 + $0x1f8] sm:$0xff]  }
 0x630   :  { %2660 = vmatprep.subr.bf16.mxu0 %v2587_v58  ;;  %3962 = vmatprep.subr.bf16.mxu1 %v4359_v13  ;;  %v2566_v7 = vmul.f32 %v2534_v48, %v2505_v28  ;;  %v4399_v48 = vld [vmem:[%s6104_s16 + $0x110] sm:$0xff]  }
 0x631   :  { %v2507_v2 = vpop.f32.mrf.mxu1 }
 0x632   :  { %v2567_v60 = vmul.f32 %v2535_v61, %v2507_v2  ;;  %v2590_v51 = vpack.c.bf16 %v2566_v7, %v2558_v63  ;;  %v4384_v2 = vld [vmem:[%s6104_s16 + $0x130] sm:$0xff]   ;;  %v4408_v7 = vld [vmem:[%s6104_s16 + $0x1a0] sm:$0xff]  }
 0x633   :  { %v2511_v4 = vpop.f32.mrf.mxu1  ;;  %2661 = vmatpush1.bf16.msra.mxu0 %v2586_v62  ;;  %3963 = vmatpush3.bf16.msra.mxu1 %v4360_v14 }
 0x634   :  { %3964 = vmatprep.subr.bf16.mxu1 %v4361_v40  ;;  %v2574_v9 = vmul.f32 %v2542_v11, %v2511_v4  ;;  %v2591_v27 = vpack.c.bf16 %v2567_v60, %v2559_v30  ;;  %v4386_v4 = vld [vmem:[%s6104_s16 + $0x168] sm:$0xff]   ;;  %v4400_v60 = vld [vmem:[%s6104_s16 + $0x1b0] sm:$0xff]   ;;  %v4406_v30 = vld [vmem:[%s6104_s16 + $0x1e0] sm:$0xff]  }
 0x635   :  { %v2513_v41 = vpop.f32.mrf.mxu1 }
 0x636   :  { %3788 = vmatmul.mubr.msk.bf16.vlgmr.msra.gmra.mxu0 %vm2601_vm6, %v5794_v31  ;;  %v2575_v19 = vmul.f32 %v2543_v32, %v2513_v41  ;;  %v4392_v41 = vld [vmem:[%s6104_s16 + $0x120] sm:$0xff]  }
 0x637   :  { %v2515_v43 = vpop.f32.mrf.mxu1  ;;  %2760 = vmatprep.mubr.bf16.mxu0 %v6144_v8  ;;  %3965 = vmatpush3.bf16.msra.mxu1 %v4363_v29  ;;  %v4388_v29 = vld [vmem:[%s6104_s16 + $0x128] sm:$0xff]  }
 0x638   :  { %3966 = vmatprep.subr.bf16.mxu1 %v4365_v25  ;;  %v2582_v17 = vmul.f32 %v2550_v18, %v2515_v43  ;;  %v4390_v25 = vld [vmem:[%s6104_s16 + $0x160] sm:$0xff]   ;;  %v4393_v18 = vld [vmem:[%s6104_s16 + $0x158] sm:$0xff]  }
 0x639   :  { %v2517_v8 = vpop.f32.mrf.mxu1 }
 0x63a   :  { %v2583_v36 = vmul.f32 %v2551_v22, %v2517_v8  ;;  %v2598_v50 = vpack.c.bf16 %v2582_v17, %v2574_v9  ;;  %v4395_v22 = vld [vmem:[%s6104_s16 + $0x118] sm:$0xff]   ;;  %v4403_v9 = vld [vmem:[%s6104_s16 + $0x108] sm:$0xff]  }
 0x63b   :  { %3967 = vmatpush3.bf16.msra.mxu1 %v4367_v42  ;;  %v4396_v42 = vld [vmem:[%s6104_s16 + $0x1b8] sm:$0xff]  }
 0x63c   :  { %v2599_v53 = vpack.c.bf16 %v2583_v36, %v2575_v19  ;;  %3968 = vmatprep.subr.bf16.mxu1 %v4369_v5  ;;  %v4397_v5 = vld [vmem:[%s6104_s16 + $0x150] sm:$0xff]   ;;  %v4401_v19 = vld [vmem:[%s6104_s16 + $0x148] sm:$0xff]  }
 0x63d   :  { %v4402_v36 = vld [vmem:[%s6104_s16 + $0x1e8] sm:$0xff]  }
 0x63e   :  { %2740 = vmatprep.subr.bf16.mxu0 %v2599_v53  ;;  %v4407_v53 = vld [vmem:[%s6104_s16 + $0x100] sm:$0xff]  }
 0x63f   :  { %2741 = vmatpush1.bf16.msra.mxu0 %v2598_v50  ;;  %3969 = vmatpush3.bf16.msra.mxu1 %v4371_v12  ;;  %v4404_v12 = vld [vmem:[%s6104_s16 + $0x1a8] sm:$0xff]   ;;  %v4409_v50 = vld [vmem:[%s6104_s16 + $0x1d8] sm:$0xff]  }
 0x640   :  { %2742 = vmatprep.subr.bf16.mxu0 %v2591_v27 }
 0x643   :  { %2743 = vmatpush1.bf16.msra.mxu0 %v2590_v51  ;;  %v4410_v51 = vld [vmem:[%s6104_s16 + $0x198] sm:$0xff]  }
 0x644   :  { %3978 = vmatprep.subr.bf16.mxu0 %v4362_v21 }
 0x646   :  { %3790 = vmatmul.mubr.msk.bf16.vlgmr.msra.gmra.mxu0 %vm2601_vm6, %v5794_v31  ;;  %v4373_v31 = vld [vmem:[%s6104_s16 + $0x40] sm:$0xff]  }
 0x647   :  { %3979 = vmatpush3.bf16.msra.mxu0 %v4364_v47  ;;  %3970 = vmatprep.subr.bf16.mxu1 %v4373_v31  ;;  %v4413_v31 = vld [vmem:[%s6104_s16 + $0x1c8] sm:$0xff]  }
 0x648   :  { %3980 = vmatprep.subr.bf16.mxu0 %v4366_v52  ;;  %3971 = vmatpush3.bf16.msra.mxu1 %v4375_v56  ;;  %v4411_v52 = vld [vmem:[%s6104_s16 + $0x1d0] sm:$0xff]   ;;  %v4415_v56 = vld [vmem:[%s6104_s16 + $0x1c0] sm:$0xff]  }
 0x649   :  { %4000 = vmatprep.subr.bf16.mxu1 %v4378_v35  ;;  %v4417_v35 = vld [vmem:[%s6107_s18 + $0x18] sm:$0xff]  }
 0x64b   :  { %3981 = vmatpush3.bf16.msra.mxu0 %v4368_v34 }
 0x64c   :  { %3982 = vmatprep.subr.bf16.mxu0 %v4370_v54 }
 0x64f   :  { %3983 = vmatpush3.bf16.msra.mxu0 %v4372_v3  ;;  %v4412_v3 = vld [vmem:[%s6104_s16 + $0x190] sm:$0xff]  }
 0x650   :  { %3984 = vmatprep.subr.bf16.mxu0 %v4374_v46  ;;  %v4414_v46 = vld [vmem:[%s6104_s16 + $0x188] sm:$0xff]  }
 0x653   :  { %3985 = vmatpush3.bf16.msra.mxu0 %v4376_v24  ;;  %v4416_v24 = vld [vmem:[%s6104_s16 + $0x180] sm:$0xff]  }
 0x654   :  { %3986 = vmatprep.subr.bf16.mxu0 %v4377_v26 }
 0x657   :  { %3987 = vmatpush3.bf16.msra.mxu0 %v4379_v45  ;;  %v4418_v45 = vld [vmem:[%s6107_s18 + $0x10] sm:$0xff]  }
 0x658   :  { %3988 = vmatprep.subr.bf16.mxu0 %v4381_v1  ;;  %v4419_v1 = vld [vmem:[%s6107_s18 + $0x8] sm:$0xff]  }
 0x65b   :  { %3989 = vmatpush3.bf16.msra.mxu0 %v4383_v16  ;;  %v4420_v16 = vld [vmem:[%s6107_s18] sm:$0xff]  }
 0x65c   :  { %3990 = vmatprep.subr.bf16.mxu0 %v4385_v38 }
 0x65f   :  { %3991 = vmatpush3.bf16.msra.mxu0 %v4387_v15 }
 0x660   :  { %3992 = vmatprep.subr.bf16.mxu0 %v4389_v57 }
 0x663   :  { %3993 = vmatpush3.bf16.msra.mxu0 %v4391_v37 }
 0x664   :  { %4022 = vmatprep.subr.bf16.mxu0 %v4394_v33 }
 0x6e6   :  { %v2639_v44 = vpop.f32.mrf.mxu0  ;;  %v5954_v59 = vpop.f32.mrf.mxu1 }
 0x6e7   :  { %v2769_v23 = vpack.c.bf16 %v2639_v44, %v2639_v44  ;;  %v2773_v63 = vpack.c.bf16 %v5954_v59, %v5954_v59 }
 0x6e8   :  { %v2641_v13 = vpop.f32.mrf.mxu0  ;;  %v2723_v49 = vpop.f32.mrf.mxu1 }
 0x6e9   :  { %v2770_v39 = vpack.c.bf16 %v2641_v13, %v2641_v13  ;;  %v2774_v58 = vpack.c.bf16 %v2723_v49, %v2723_v49 }
 0x6ea   :  { %v2643_v28 = vpop.f32.mrf.mxu0  ;;  %v2725_v14 = vpop.f32.mrf.mxu1 }
 0x6eb   :  { %3328 = vmatprep.mubr.bf16.mxu1 %v2770_v39 }
 0x6ec   :  { %3329 = vmatmul.mubr.bf16.vlgmr.msra.gmra.mxu1 %v2769_v23  ;;  %v2644_v40 = vpop.f32.mrf.mxu0  ;;  %v2726_v62 = vpop.f32.mrf.mxu1 }
 0x6ed   :  { %4001 = vmatpush3.bf16.msra.mxu1 %v4380_v20  ;;  %3408 = vmatprep.mubr.bf16.mxu1 %v2774_v58 }
 0x6ee   :  { %4002 = vmatprep.subr.bf16.mxu1 %v4382_v0  ;;  %v3791_v0 = vld [vmem:[%s6108_s17] ss:$0 sm:$0xff] }
 0x6f1   :  { %4003 = vmatpush3.bf16.msra.mxu1 %v4384_v2 }
 0x6f2   :  { %4004 = vmatprep.subr.bf16.mxu1 %v4386_v4 }
 0x6f5   :  { %4005 = vmatpush3.bf16.msra.mxu1 %v4388_v29 }
 0x6f6   :  { %v2680_v61 = vpop.f32.mrf.mxu0  ;;  %4006 = vmatprep.subr.bf16.mxu1 %v4390_v25 }
 0x6f7   :  { %v2771_v11 = vpack.c.bf16 %v2680_v61, %v2680_v61 }
 0x6f8   :  { %v2682_v32 = vpop.f32.mrf.mxu0 }
 0x6f9   :  { %v2772_v43 = vpack.c.bf16 %v2682_v32, %v2682_v32  ;;  %4007 = vmatpush3.bf16.msra.mxu1 %v4392_v41 }
 0x6fa   :  { %4008 = vmatprep.subr.bf16.mxu1 %v4393_v18  ;;  %v2684_v17 = vpop.f32.mrf.mxu0 }
 0x6fb   :  { %3368 = vmatprep.mubr.bf16.mxu0 %v2772_v43 }
 0x6fc   :  { %3369 = vmatmul.mubr.bf16.vlgmr.msra.gmra.mxu0 %v2771_v11  ;;  %v2685_v8 = vpop.f32.mrf.mxu0  ;;  %v27_v11 = vstv %s6110_s21 }
 0x6fd   :  { %4009 = vmatpush3.bf16.msra.mxu1 %v4395_v22  ;;  %4023 = vmatpush3.bf16.msra.mxu0 %v4396_v42  ;;  %v4421_v22 = vld [vmem:[%s6109_s20 + $0x8] sm:$0xff]   ;;  %v4422_v42 = vld [vmem:[%s6109_s20] sm:$0xff]   ;;  %28 = vst [vmem:[#allocation3] sm:$0x1] %v27_v11 }
 0x6fe   :  { %4010 = vmatprep.subr.bf16.mxu1 %v4397_v5  ;;  %4024 = vmatprep.subr.bf16.mxu0 %v4398_v55  ;;  %v3856_v5 = vld [vmem:[%s6111_s19] ss:$0 sm:$0xff] }
 0x701   :  { %4011 = vmatpush3.bf16.msra.mxu1 %v4399_v48  ;;  %4025 = vmatpush3.bf16.msra.mxu0 %v4400_v60 }
 0x702   :  { %4012 = vmatprep.subr.bf16.mxu1 %v4401_v19  ;;  %4026 = vmatprep.subr.bf16.mxu0 %v4402_v36 }
 0x705   :  { %4013 = vmatpush3.bf16.msra.mxu1 %v4403_v9  ;;  %4027 = vmatpush3.bf16.msra.mxu0 %v4404_v12  ;;  %v3862_v9 = vld [vmem:[#allocation3] ss:$0 sm:$0xff] }
 0x706   :  { %4014 = vmatprep.subr.bf16.mxu1 %v4405_v10  ;;  %4028 = vmatprep.subr.bf16.mxu0 %v4406_v30  ;;  %v2762_v27 = vpop.f32.mrf.mxu0 }
 0x707   :  { %v2775_v26 = vpack.c.bf16 %v2762_v27, %v2762_v27 }
 0x708   :  { %v2764_v21 = vpop.f32.mrf.mxu0 }
 0x709   :  { %4015 = vmatpush3.bf16.msra.mxu1 %v4407_v53  ;;  %4029 = vmatpush3.bf16.msra.mxu0 %v4408_v7  ;;  %v2776_v47 = vpack.c.bf16 %v2764_v21, %v2764_v21 }
 0x70a   :  { %4030 = vmatprep.subr.bf16.mxu0 %v4409_v50  ;;  %v2766_v34 = vpop.f32.mrf.mxu0  ;;  %4168 = vmatprep.subr.bf16.mxu1 %v6145_v6 }
 0x70b   :  { %3448 = vmatprep.mubr.bf16.mxu0 %v2776_v47 }
 0x70c   :  { %3409 = vmatmul.mubr.bf16.vlgmr.msra.gmra.mxu1 %v2773_v63  ;;  %v2767_v54 = vpop.f32.mrf.mxu0 }
 0x70d   :  { %4031 = vmatpush3.bf16.msra.mxu0 %v4410_v51  ;;  %4176 = vmatprep.mubr.msk.bf16.mxu1 %vm4428_vm1, %v6145_v6 }
 0x70e   :  { %4032 = vmatprep.subr.bf16.mxu0 %v4411_v52  ;;  %4169 = vmatpush3.bf16.msra.mxu1 %v4417_v35 }
 0x70f   :  { %4170 = vmatprep.subr.bf16.mxu1 %v6145_v6 }
 0x711   :  { %4033 = vmatpush3.bf16.msra.mxu0 %v4412_v3 }
 0x712   :  { %4034 = vmatprep.subr.bf16.mxu0 %v4413_v31  ;;  %4171 = vmatpush3.bf16.msra.mxu1 %v4418_v45 }
 0x713   :  { %4172 = vmatprep.subr.bf16.mxu1 %v6145_v6 }
 0x715   :  { %4035 = vmatpush3.bf16.msra.mxu0 %v4414_v46 }
 0x716   :  { %4036 = vmatprep.subr.bf16.mxu0 %v4415_v56  ;;  %4173 = vmatpush3.bf16.msra.mxu1 %v4419_v1 }
 0x717   :  { %4174 = vmatprep.subr.bf16.mxu1 %v6145_v6 }
 0x719   :  { %4037 = vmatpush3.bf16.msra.mxu0 %v4416_v24 }
 0x71a   :  { %4180 = vmatprep.subr.bf16.mxu0 %v6145_v6  ;;  %4175 = vmatpush3.bf16.msra.mxu1 %v4420_v16 }
 0x71c   :  { %3449 = vmatmul.mubr.bf16.vlgmr.msra.gmra.mxu0 %v2775_v26 }
 0x71d   :  { %4184 = vmatprep.mubr.msk.bf16.mxu0 %vm4428_vm1, %v6145_v6  ;;  %4181 = vmatpush3.bf16.msra.mxu0 %v4421_v22 }
 0x71e   :  { %4182 = vmatprep.subr.bf16.mxu0 %v6145_v6 }
 0x721   :  { %4183 = vmatpush3.bf16.msra.mxu0 %v4422_v42 }
 0x7ac   :  { %v3972_v38 = vpop.f32.mrf.mxu1 }
 0x7ae   :  { %v3973_v15 = vpop.f32.mrf.mxu1 }
 0x7af   :  { %v3974_v58 = vadd.f32 %v3973_v15, %v3972_v38 }
 0x7b0   :  { %v3975_v57 = vpop.f32.mrf.mxu1 }
 0x7b1   :  { %v3331_v14 = vadd.f32 %v3974_v58, %v3791_v0 }
 0x7b2   :  { %v3976_v37 = vpop.f32.mrf.mxu1 }
 0x7bc   :  { %v3994_v33 = vpop.f32.mrf.mxu0 }
 0x7be   :  { %v3995_v44 = vpop.f32.mrf.mxu0 }
 0x7bf   :  { %v3996_v28 = vadd.f32 %v3995_v44, %v3994_v33 }
 0x7c0   :  { %v3997_v59 = vpop.f32.mrf.mxu0 }
 0x7c1   :  { %v3371_v2 = vadd.f32 %v3996_v28, %v3331_v14 }
 0x7c2   :  { %v3998_v23 = vpop.f32.mrf.mxu0 }
 0x7cc   :  { %v4016_v13 = vpop.f32.mrf.mxu1 }
 0x7ce   :  { %v4017_v49 = vpop.f32.mrf.mxu1 }
 0x7cf   :  { %v4018_v40 = vadd.f32 %v4017_v49, %v4016_v13 }
 0x7d0   :  { %v4019_v39 = vpop.f32.mrf.mxu1 }
 0x7d1   :  { %v3411_v29 = vadd.f32 %v4018_v40, %v3371_v2 }
 0x7d2   :  { %v4020_v20 = vpop.f32.mrf.mxu1 }
 0x7dc   :  { %v4038_v62 = vpop.f32.mrf.mxu0 }
 0x7de   :  { %v4039_v4 = vpop.f32.mrf.mxu0 }
 0x7df   :  { %v4040_v25 = vadd.f32 %v4039_v4, %v4038_v62 }
 0x7e0   :  { %v4041_v41 = vpop.f32.mrf.mxu0 }
 0x7e1   :  { %v3451_v61 = vadd.f32 %v4040_v25, %v3411_v29 }
 0x7e2   :  { %v4042_v18 = vpop.f32.mrf.mxu0 }
 0x7e3   :  { %v3456_v32 = vmax.f32 %v3451_v61, 0.0 }
 0x7e5   :  { %v3457_v43 = vpack.c.bf16 %v3456_v32, %v3456_v32 }
 0x7e7   :  { %4177 = vmatmul.mubr.msk.bf16.vlgmr.msra.gmra.mxu1 %vm426_vm3, %v3457_v43 }
 0x8a7   :  { %v3534_v55 = vpop.f32.mrf.mxu1 }
 0x8a8   :  { %v3535_v17 = vadd.f32 %v3856_v5, %v3534_v55 }
 0x8a9   :  { %v4178_v8 = vpop.f32.mrf.mxu1 }
 0x8aa   :  { %v3540_v48 = vmax.f32 %v3535_v17, 0.0 }
 0x8ab   :  { %v3537_v60 = vpop.f32.mrf.mxu1 }
 0x8ac   :  { %v3541_v19 = vpack.c.bf16 %v3540_v48, %v3540_v48 }
 0x8ad   :  { %v4179_v36 = vpop.f32.mrf.mxu1 }
 0x8ae   :  { %4185 = vmatmul.mubr.msk.bf16.vlgmr.msra.gmra.mxu0 %vm2601_vm6, %v3541_v19 }
 0x96e   :  { %v3602_v12 = vpop.f32.mrf.mxu0 }
 0x96f   :  { %v3603_v10 = vadd.f32 %v3862_v9, %v3602_v12 }
 0x970   :  { %v4186_v6 = vpop.f32.mrf.mxu0 }
 0x971   :  { %3609 = vst.msk [vmem:[%s6112_s22] sm:$0x3] %vm3608_vm7, %v3603_v10 }
 0x972   :  { %v3605_v30 = vpop.f32.mrf.mxu0 }
 0x974   :  { %v4187_v53 = vpop.f32.mrf.mxu0 }

</bundles_post_ra>
